<compile_context>
chip_gen: v5e
topology: v5e:2x2
jax: 0.10.0
libtpu: 0.0.40
codegen_flags: <defaults>
</compile_context>

<pallas_src>
import functools

import jax
import jax.numpy as jnp
import numpy as np
from jax.experimental import pallas as pl
from jax.experimental.pallas import tpu as pltpu


def _gaussian_1d(kernel_size: int, sigma: float) -> np.ndarray:
    """Normalized 1-D Gaussian; outer(g, g) equals the module's 2-D window."""
    x = np.arange(kernel_size, dtype=np.float64)
    mean = (kernel_size - 1) / 2.0
    g = np.exp(-((x - mean) ** 2) / (2.0 * sigma ** 2))
    return g / g.sum()


def _band_matrix_rows(n: int, g1d: np.ndarray, pad: int) -> np.ndarray:
    """(n, n) band matrix M with M[i, j] = g1d[j - i + pad] (zero outside band).

    Left-multiplying a plane by M is the 1-D Gaussian cross-correlation along
    rows with implicit zero padding (border taps truncated == zero-padded conv).
    """
    k = g1d.shape[0]
    m = np.zeros((n, n), dtype=np.float64)
    for i in range(n):
        for d in range(k):
            j = i + d - pad
            if 0 <= j < n:
                m[i, j] = g1d[d]
    return m


def _ssim_kernel(gw_ref, ght_ref, x1_ref, x2_ref, o_ref, tscr_ref, *, tp, c1, c2):
    # gw_ref:  (W, W) right-multiply band matrix for the W-axis pass.
    # ght_ref: (H, H) right-multiply band matrix for the H-axis pass
    #          (applied to plane-transposed data).
    # x1_ref/x2_ref: (tp, H, W) blocks of image planes.
    # o_ref: (1, tp, 1) per-plane SSIM-map sums.
    # tscr_ref: (4*tp, W, H) VMEM scratch holding the transposed W-pass result.
    H = x1_ref.shape[1]
    W = x1_ref.shape[2]
    gw = gw_ref[...]
    ght = ght_ref[...]

    a = x1_ref[...].astype(jnp.float32)          # (tp, H, W)
    b = x2_ref[...].astype(jnp.float32)

    # 4 statistics for all planes (S(a^2)+S(b^2) folded into S(a^2+b^2)).
    stacked = jnp.concatenate([a, b, a * a + b * b, a * b], axis=0)   # (4tp, H, W)

    # W-axis smoothing pass: a single MXU matmul with M = 4*tp*H.
    tw = jnp.dot(stacked.reshape(4 * tp * H, W), gw,
                 preferred_element_type=jnp.float32)                  # (4tp*H, W)

    # Per-plane 2-D transposes (XLU) stored straight into scratch so the
    # H-axis pass is again a single big matmul.
    for n in range(4 * tp):
        tscr_ref[n] = tw[n * H:(n + 1) * H, :].T                      # (W, H)

    # H-axis smoothing pass: a single MXU matmul with M = 4*tp*W.  The result
    # stays in per-plane-transposed (W, H) layout; the elementwise SSIM math
    # and the reduction are layout-agnostic, so no transpose back is needed.
    u = jnp.dot(tscr_ref[...].reshape(4 * tp * W, H), ght,
                preferred_element_type=jnp.float32)                   # (4tp*W, H)
    u3 = u.reshape(4 * tp, W, H)

    mu1 = u3[0 * tp:1 * tp]                                           # (tp, W, H)
    mu2 = u3[1 * tp:2 * tp]
    q = u3[2 * tp:3 * tp]                                             # S(a^2 + b^2)
    r = u3[3 * tp:4 * tp]                                             # S(a * b)

    mu1_sq = mu1 * mu1
    mu2_sq = mu2 * mu2
    mu1_mu2 = mu1 * mu2
    sigma12 = r - mu1_mu2
    sigma_sum = q - mu1_sq - mu2_sq        # sigma1_sq + sigma2_sq

    num = (2.0 * mu1_mu2 + c1) * (2.0 * sigma12 + c2)
    den = (mu1_sq + mu2_sq + c1) * (sigma_sum + c2)
    ssim_map = num * pl.reciprocal(den)                               # (tp, W, H)

    # Fused reduction: collapse the whole map in-kernel; only tp floats/step
    # are written back to HBM.
    ps = jnp.sum(ssim_map, axis=2)                                    # (tp, W)
    ps = jnp.sum(ps, axis=1, keepdims=True)                           # (tp, 1)
    o_ref[...] = ps.reshape(1, tp, 1)


def _vmem_capacity_bytes() -> int:
    """Per-TensorCore VMEM capacity; conservative v7x fallback (64 MiB)."""
    try:
        info = pltpu.get_tpu_info()
        cap = getattr(info, "vmem_capacity_bytes", None)
        if cap:
            return int(cap)
    except Exception:
        pass
    return 64 * 1024 * 1024


def _choose_block_planes(p, h, w, itemsize, budget_bytes, max_tp=32):
    """Largest divisor of P (<= max_tp) whose VMEM footprint fits the budget.

    Keeps nb = P // tp >= 2 whenever possible so the 'parallel' grid axis has
    at least one block per TensorCore (v7x has 2 TCs per chip).
    """
    # Per image plane per block: 2 inputs x double-buffer x itemsize
    # + 4 f32 scratch planes + ~12 live f32 temporaries (stacked/tw/u/etc).
    per_plane = h * w * (4 * itemsize + 64)
    best = 1
    for tp in range(1, min(p, max_tp) + 1):
        if p % tp:
            continue
        if p >= 2 and p // tp < 2:     # keep >= 2 grid steps for megacore/2-TC
            continue
        if tp * per_plane <= budget_bytes:
            best = tp
    return best


def ssim(img1: jax.Array, img2: jax.Array, *, window_size: int = 11,
         sigma: float = 1.5, keep_batch_dim: bool = False) -> jax.Array:
    """SSIM matching the PyTorch module's forward semantics. Inputs: (B, C, H, W)."""
    assert img1.shape == img2.shape and img1.ndim == 4
    B, C, H, W = img1.shape
    P = B * C
    pad = (window_size - 1) // 2

    g1 = _gaussian_1d(window_size, sigma)
    # Right-multiply band matrices (zero-padded 'same' cross-correlation):
    #   W-axis pass:              X      @ gw_rm
    #   H-axis pass (transposed): X^T    @ gh_rm
    gw_rm = jnp.asarray(_band_matrix_rows(W, g1, pad).T, dtype=jnp.float32)
    gh_rm = jnp.asarray(_band_matrix_rows(H, g1, pad).T, dtype=jnp.float32)

    c1, c2 = 0.01 ** 2, 0.03 ** 2

    # Free reshape: flatten (B, C) into one plane axis; no padding, no f32 copy.
    x1 = img1.reshape(P, H, W)
    x2 = img2.reshape(P, H, W)

    # Generation-aware VMEM accounting (v7x: 64 MiB/TC; v5e/v6e: 128 MiB).
    vmem_cap = _vmem_capacity_bytes()
    vmem_limit = min(int(0.75 * vmem_cap), 96 * 1024 * 1024)
    const_bytes = 2 * 4 * (H * H + W * W)          # double-buffered band matrices
    data_budget = max(0, int(0.55 * vmem_limit) - const_bytes)

    tp = _choose_block_planes(P, H, W, x1.dtype.itemsize, data_budget)
    nb = P // tp

    kernel = functools.partial(_ssim_kernel, tp=tp, c1=c1, c2=c2)

    plane_sums = pl.pallas_call(
        kernel,
        out_shape=jax.ShapeDtypeStruct((nb, tp, 1), jnp.float32),
        grid_spec=pltpu.PrefetchScalarGridSpec(
            num_scalar_prefetch=0,
            grid=(nb,),
            in_specs=[
                pl.BlockSpec((W, W), lambda i: (0, 0)),        # Gw (resident)
                pl.BlockSpec((H, H), lambda i: (0, 0)),        # Gh^T (resident)
                pl.BlockSpec((tp, H, W), lambda i: (i, 0, 0)),
                pl.BlockSpec((tp, H, W), lambda i: (i, 0, 0)),
            ],
            out_specs=pl.BlockSpec((1, tp, 1), lambda i: (i, 0, 0)),
            scratch_shapes=[pltpu.VMEM((4 * tp, W, H), jnp.float32)],
        ),
        compiler_params=pltpu.CompilerParams(
            dimension_semantics=("parallel",),
            vmem_limit_bytes=vmem_limit,
        ),
    )(gw_rm, gh_rm, x1, x2)

    per_plane = plane_sums.reshape(B, C)           # per-(B,C) SSIM-map sums
    if keep_batch_dim:
        return per_plane.sum(axis=-1) / float(C * H * W)
    return per_plane.sum() / float(B * C * H * W)


def _ssim_reference(img1, img2, *, window_size=11, sigma=1.5, keep_batch_dim=False):
    """Pure-JAX reference (depthwise conv via lax) for a sanity check."""
    B, C, H, W = img1.shape
    pad = (window_size - 1) // 2
    g1 = _gaussian_1d(window_size, sigma)
    w2d = np.outer(g1, g1)
    w2d = w2d / w2d.sum()
    w = jnp.asarray(np.tile(w2d[None, None], (C, 1, 1, 1)), dtype=jnp.float32)

    def smooth(x):
        return jax.lax.conv_general_dilated(
            x, w, window_strides=(1, 1), padding=[(pad, pad), (pad, pad)],
            dimension_numbers=("NCHW", "OIHW", "NCHW"), feature_group_count=C)

    c1, c2 = 0.01 ** 2, 0.03 ** 2
    mu1, mu2 = smooth(img1), smooth(img2)
    mu1_sq, mu2_sq, mu1_mu2 = mu1 * mu1, mu2 * mu2, mu1 * mu2
    s1 = smooth(img1 * img1) - mu1_sq
    s2 = smooth(img2 * img2) - mu2_sq
    s12 = smooth(img1 * img2) - mu1_mu2
    m = (2 * mu1_mu2 + c1) * (2 * s12 + c2) / ((mu1_sq + mu2_sq + c1) * (s1 + s2 + c2))
    return m.mean(axis=(1, 2, 3)) if keep_batch_dim else m.mean()


if __name__ == "__main__":
    key = jax.random.PRNGKey(0)
    k1, k2 = jax.random.split(key)
    B, C, H, W = 2, 4, 16, 16
    img1 = jax.random.uniform(k1, (B, C, H, W), dtype=jnp.float32)
    img2 = jax.random.uniform(k2, (B, C, H, W), dtype=jnp.float32)

    out = ssim(img1, img2)
    jax.block_until_ready(out)

    out_b = ssim(img1, img2, keep_batch_dim=True)
    jax.block_until_ready(out_b)

    ref = _ssim_reference(img1, img2)
    ref_b = _ssim_reference(img1, img2, keep_batch_dim=True)
    assert jnp.allclose(out, ref, atol=1e-4, rtol=1e-4)
    assert jnp.allclose(out_b, ref_b, atol=1e-4, rtol=1e-4)

    print("KERNEL_OK")
</pallas_src>

<mosaic_0001>
module attributes {stable_mosaic.version = 11 : i64} {
  func.func @_ssim_kernel(%arg0: i32, %arg1: memref<16x16xf32, #tpu.memory_space<vmem>>, %arg2: memref<16x16xf32, #tpu.memory_space<vmem>>, %arg3: memref<4x16x16xf32, #tpu.memory_space<vmem>>, %arg4: memref<4x16x16xf32, #tpu.memory_space<vmem>>, %arg5: memref<1x4x1xf32, #tpu.memory_space<vmem>>, %arg6: memref<16x16x16xf32, #tpu.memory_space<vmem>>) attributes {dimension_semantics = [#tpu.dimension_semantics<parallel>], iteration_bounds = array<i64: 2>, scalar_prefetch = 0 : i64, scratch_operands = 1 : i64, tpu.core_type = #tpu.core_type<tc>, window_params = [{pipeline_mode = #tpu.pipeline_mode<synchronous>, transform_indices = @transform_0, window_bounds = array<i64: 16, 16>}, {pipeline_mode = #tpu.pipeline_mode<synchronous>, transform_indices = @transform_1, window_bounds = array<i64: 16, 16>}, {transform_indices = @transform_2, window_bounds = array<i64: 4, 16, 16>}, {transform_indices = @transform_3, window_bounds = array<i64: 4, 16, 16>}, {transform_indices = @transform_4, window_bounds = array<i64: 1, 4, 1>}]} {
    %c0 = arith.constant 0 : index
    %c0_0 = arith.constant 0 : index
    %0 = vector.load %arg1[%c0, %c0_0] : memref<16x16xf32, #tpu.memory_space<vmem>>, vector<16x16xf32>
    %c0_1 = arith.constant 0 : index
    %c0_2 = arith.constant 0 : index
    %1 = vector.load %arg2[%c0_1, %c0_2] : memref<16x16xf32, #tpu.memory_space<vmem>>, vector<16x16xf32>
    %c0_3 = arith.constant 0 : index
    %c0_4 = arith.constant 0 : index
    %c0_5 = arith.constant 0 : index
    %2 = vector.load %arg3[%c0_3, %c0_4, %c0_5] : memref<4x16x16xf32, #tpu.memory_space<vmem>>, vector<4x16x16xf32>
    %c0_6 = arith.constant 0 : index
    %c0_7 = arith.constant 0 : index
    %c0_8 = arith.constant 0 : index
    %3 = vector.load %arg4[%c0_6, %c0_7, %c0_8] : memref<4x16x16xf32, #tpu.memory_space<vmem>>, vector<4x16x16xf32>
    %4 = arith.mulf %2, %2 : vector<4x16x16xf32>
    %5 = arith.mulf %3, %3 : vector<4x16x16xf32>
    %6 = arith.addf %4, %5 : vector<4x16x16xf32>
    %7 = arith.mulf %2, %3 : vector<4x16x16xf32>
    %8 = tpu.concatenate %2, %3, %6, %7 in 0 : vector<4x16x16xf32>, vector<4x16x16xf32>, vector<4x16x16xf32>, vector<4x16x16xf32> -> vector<16x16x16xf32>
    %9 = vector.shape_cast %8 : vector<16x16x16xf32> to vector<256x16xf32>
    %cst = arith.constant dense<0.000000e+00> : vector<256x16xf32>
    %10 = tpu.matmul %9, %0, %cst {dimension_numbers = #tpu.dot_dimension_numbers<[1], [0], [0], [1], [0, 0, 1, 1], [], []>} : vector<256x16xf32>, vector<16x16xf32>, vector<256x16xf32> -> vector<256x16xf32>
    %11 = vector.extract_strided_slice %10 {offsets = [0, 0], sizes = [16, 16], strides = [1, 1]} : vector<256x16xf32> to vector<16x16xf32>
    %12 = tpu.transpose %11, [1, 0] : vector<16x16xf32> -> vector<16x16xf32>
    %c0_9 = arith.constant 0 : index
    %c0_10 = arith.constant 0 : index
    %c0_11 = arith.constant 0 : index
    %13 = vector.load %arg6[%c0_9, %c0_10, %c0_11] : memref<16x16x16xf32, #tpu.memory_space<vmem>>, vector<1x16x16xf32>
    %14 = vector.shape_cast %13 : vector<1x16x16xf32> to vector<16x16xf32>
    %15 = vector.shape_cast %12 : vector<16x16xf32> to vector<1x16x16xf32>
    tpu.vector_store %arg6[%c0_9, %c0_10, %c0_11], %15 {strides = array<i32>} : memref<16x16x16xf32, #tpu.memory_space<vmem>>, vector<1x16x16xf32>,
    %16 = vector.extract_strided_slice %10 {offsets = [16, 0], sizes = [16, 16], strides = [1, 1]} : vector<256x16xf32> to vector<16x16xf32>
    %17 = tpu.transpose %16, [1, 0] : vector<16x16xf32> -> vector<16x16xf32>
    %c1 = arith.constant 1 : index
    %c0_12 = arith.constant 0 : index
    %c0_13 = arith.constant 0 : index
    %18 = vector.load %arg6[%c1, %c0_12, %c0_13] : memref<16x16x16xf32, #tpu.memory_space<vmem>>, vector<1x16x16xf32>
    %19 = vector.shape_cast %18 : vector<1x16x16xf32> to vector<16x16xf32>
    %20 = vector.shape_cast %17 : vector<16x16xf32> to vector<1x16x16xf32>
    tpu.vector_store %arg6[%c1, %c0_12, %c0_13], %20 {strides = array<i32>} : memref<16x16x16xf32, #tpu.memory_space<vmem>>, vector<1x16x16xf32>,
    %21 = vector.extract_strided_slice %10 {offsets = [32, 0], sizes = [16, 16], strides = [1, 1]} : vector<256x16xf32> to vector<16x16xf32>
    %22 = tpu.transpose %21, [1, 0] : vector<16x16xf32> -> vector<16x16xf32>
    %c2 = arith.constant 2 : index
    %c0_14 = arith.constant 0 : index
    %c0_15 = arith.constant 0 : index
    %23 = vector.load %arg6[%c2, %c0_14, %c0_15] : memref<16x16x16xf32, #tpu.memory_space<vmem>>, vector<1x16x16xf32>
    %24 = vector.shape_cast %23 : vector<1x16x16xf32> to vector<16x16xf32>
    %25 = vector.shape_cast %22 : vector<16x16xf32> to vector<1x16x16xf32>
    tpu.vector_store %arg6[%c2, %c0_14, %c0_15], %25 {strides = array<i32>} : memref<16x16x16xf32, #tpu.memory_space<vmem>>, vector<1x16x16xf32>,
    %26 = vector.extract_strided_slice %10 {offsets = [48, 0], sizes = [16, 16], strides = [1, 1]} : vector<256x16xf32> to vector<16x16xf32>
    %27 = tpu.transpose %26, [1, 0] : vector<16x16xf32> -> vector<16x16xf32>
    %c3 = arith.constant 3 : index
    %c0_16 = arith.constant 0 : index
    %c0_17 = arith.constant 0 : index
    %28 = vector.load %arg6[%c3, %c0_16, %c0_17] : memref<16x16x16xf32, #tpu.memory_space<vmem>>, vector<1x16x16xf32>
    %29 = vector.shape_cast %28 : vector<1x16x16xf32> to vector<16x16xf32>
    %30 = vector.shape_cast %27 : vector<16x16xf32> to vector<1x16x16xf32>
    tpu.vector_store %arg6[%c3, %c0_16, %c0_17], %30 {strides = array<i32>} : memref<16x16x16xf32, #tpu.memory_space<vmem>>, vector<1x16x16xf32>,
    %31 = vector.extract_strided_slice %10 {offsets = [64, 0], sizes = [16, 16], strides = [1, 1]} : vector<256x16xf32> to vector<16x16xf32>
    %32 = tpu.transpose %31, [1, 0] : vector<16x16xf32> -> vector<16x16xf32>
    %c4 = arith.constant 4 : index
    %c0_18 = arith.constant 0 : index
    %c0_19 = arith.constant 0 : index
    %33 = vector.load %arg6[%c4, %c0_18, %c0_19] : memref<16x16x16xf32, #tpu.memory_space<vmem>>, vector<1x16x16xf32>
    %34 = vector.shape_cast %33 : vector<1x16x16xf32> to vector<16x16xf32>
    %35 = vector.shape_cast %32 : vector<16x16xf32> to vector<1x16x16xf32>
    tpu.vector_store %arg6[%c4, %c0_18, %c0_19], %35 {strides = array<i32>} : memref<16x16x16xf32, #tpu.memory_space<vmem>>, vector<1x16x16xf32>,
    %36 = vector.extract_strided_slice %10 {offsets = [80, 0], sizes = [16, 16], strides = [1, 1]} : vector<256x16xf32> to vector<16x16xf32>
    %37 = tpu.transpose %36, [1, 0] : vector<16x16xf32> -> vector<16x16xf32>
    %c5 = arith.constant 5 : index
    %c0_20 = arith.constant 0 : index
    %c0_21 = arith.constant 0 : index
    %38 = vector.load %arg6[%c5, %c0_20, %c0_21] : memref<16x16x16xf32, #tpu.memory_space<vmem>>, vector<1x16x16xf32>
    %39 = vector.shape_cast %38 : vector<1x16x16xf32> to vector<16x16xf32>
    %40 = vector.shape_cast %37 : vector<16x16xf32> to vector<1x16x16xf32>
    tpu.vector_store %arg6[%c5, %c0_20, %c0_21], %40 {strides = array<i32>} : memref<16x16x16xf32, #tpu.memory_space<vmem>>, vector<1x16x16xf32>,
    %41 = vector.extract_strided_slice %10 {offsets = [96, 0], sizes = [16, 16], strides = [1, 1]} : vector<256x16xf32> to vector<16x16xf32>
    %42 = tpu.transpose %41, [1, 0] : vector<16x16xf32> -> vector<16x16xf32>
    %c6 = arith.constant 6 : index
    %c0_22 = arith.constant 0 : index
    %c0_23 = arith.constant 0 : index
    %43 = vector.load %arg6[%c6, %c0_22, %c0_23] : memref<16x16x16xf32, #tpu.memory_space<vmem>>, vector<1x16x16xf32>
    %44 = vector.shape_cast %43 : vector<1x16x16xf32> to vector<16x16xf32>
    %45 = vector.shape_cast %42 : vector<16x16xf32> to vector<1x16x16xf32>
    tpu.vector_store %arg6[%c6, %c0_22, %c0_23], %45 {strides = array<i32>} : memref<16x16x16xf32, #tpu.memory_space<vmem>>, vector<1x16x16xf32>,
    %46 = vector.extract_strided_slice %10 {offsets = [112, 0], sizes = [16, 16], strides = [1, 1]} : vector<256x16xf32> to vector<16x16xf32>
    %47 = tpu.transpose %46, [1, 0] : vector<16x16xf32> -> vector<16x16xf32>
    %c7 = arith.constant 7 : index
    %c0_24 = arith.constant 0 : index
    %c0_25 = arith.constant 0 : index
    %48 = vector.load %arg6[%c7, %c0_24, %c0_25] : memref<16x16x16xf32, #tpu.memory_space<vmem>>, vector<1x16x16xf32>
    %49 = vector.shape_cast %48 : vector<1x16x16xf32> to vector<16x16xf32>
    %50 = vector.shape_cast %47 : vector<16x16xf32> to vector<1x16x16xf32>
    tpu.vector_store %arg6[%c7, %c0_24, %c0_25], %50 {strides = array<i32>} : memref<16x16x16xf32, #tpu.memory_space<vmem>>, vector<1x16x16xf32>,
    %51 = vector.extract_strided_slice %10 {offsets = [128, 0], sizes = [16, 16], strides = [1, 1]} : vector<256x16xf32> to vector<16x16xf32>
    %52 = tpu.transpose %51, [1, 0] : vector<16x16xf32> -> vector<16x16xf32>
    %c8 = arith.constant 8 : index
    %c0_26 = arith.constant 0 : index
    %c0_27 = arith.constant 0 : index
    %53 = vector.load %arg6[%c8, %c0_26, %c0_27] : memref<16x16x16xf32, #tpu.memory_space<vmem>>, vector<1x16x16xf32>
    %54 = vector.shape_cast %53 : vector<1x16x16xf32> to vector<16x16xf32>
    %55 = vector.shape_cast %52 : vector<16x16xf32> to vector<1x16x16xf32>
    tpu.vector_store %arg6[%c8, %c0_26, %c0_27], %55 {strides = array<i32>} : memref<16x16x16xf32, #tpu.memory_space<vmem>>, vector<1x16x16xf32>,
    %56 = vector.extract_strided_slice %10 {offsets = [144, 0], sizes = [16, 16], strides = [1, 1]} : vector<256x16xf32> to vector<16x16xf32>
    %57 = tpu.transpose %56, [1, 0] : vector<16x16xf32> -> vector<16x16xf32>
    %c9 = arith.constant 9 : index
    %c0_28 = arith.constant 0 : index
    %c0_29 = arith.constant 0 : index
    %58 = vector.load %arg6[%c9, %c0_28, %c0_29] : memref<16x16x16xf32, #tpu.memory_space<vmem>>, vector<1x16x16xf32>
    %59 = vector.shape_cast %58 : vector<1x16x16xf32> to vector<16x16xf32>
    %60 = vector.shape_cast %57 : vector<16x16xf32> to vector<1x16x16xf32>
    tpu.vector_store %arg6[%c9, %c0_28, %c0_29], %60 {strides = array<i32>} : memref<16x16x16xf32, #tpu.memory_space<vmem>>, vector<1x16x16xf32>,
    %61 = vector.extract_strided_slice %10 {offsets = [160, 0], sizes = [16, 16], strides = [1, 1]} : vector<256x16xf32> to vector<16x16xf32>
    %62 = tpu.transpose %61, [1, 0] : vector<16x16xf32> -> vector<16x16xf32>
    %c10 = arith.constant 10 : index
    %c0_30 = arith.constant 0 : index
    %c0_31 = arith.constant 0 : index
    %63 = vector.load %arg6[%c10, %c0_30, %c0_31] : memref<16x16x16xf32, #tpu.memory_space<vmem>>, vector<1x16x16xf32>
    %64 = vector.shape_cast %63 : vector<1x16x16xf32> to vector<16x16xf32>
    %65 = vector.shape_cast %62 : vector<16x16xf32> to vector<1x16x16xf32>
    tpu.vector_store %arg6[%c10, %c0_30, %c0_31], %65 {strides = array<i32>} : memref<16x16x16xf32, #tpu.memory_space<vmem>>, vector<1x16x16xf32>,
    %66 = vector.extract_strided_slice %10 {offsets = [176, 0], sizes = [16, 16], strides = [1, 1]} : vector<256x16xf32> to vector<16x16xf32>
    %67 = tpu.transpose %66, [1, 0] : vector<16x16xf32> -> vector<16x16xf32>
    %c11 = arith.constant 11 : index
    %c0_32 = arith.constant 0 : index
    %c0_33 = arith.constant 0 : index
    %68 = vector.load %arg6[%c11, %c0_32, %c0_33] : memref<16x16x16xf32, #tpu.memory_space<vmem>>, vector<1x16x16xf32>
    %69 = vector.shape_cast %68 : vector<1x16x16xf32> to vector<16x16xf32>
    %70 = vector.shape_cast %67 : vector<16x16xf32> to vector<1x16x16xf32>
    tpu.vector_store %arg6[%c11, %c0_32, %c0_33], %70 {strides = array<i32>} : memref<16x16x16xf32, #tpu.memory_space<vmem>>, vector<1x16x16xf32>,
    %71 = vector.extract_strided_slice %10 {offsets = [192, 0], sizes = [16, 16], strides = [1, 1]} : vector<256x16xf32> to vector<16x16xf32>
    %72 = tpu.transpose %71, [1, 0] : vector<16x16xf32> -> vector<16x16xf32>
    %c12 = arith.constant 12 : index
    %c0_34 = arith.constant 0 : index
    %c0_35 = arith.constant 0 : index
    %73 = vector.load %arg6[%c12, %c0_34, %c0_35] : memref<16x16x16xf32, #tpu.memory_space<vmem>>, vector<1x16x16xf32>
    %74 = vector.shape_cast %73 : vector<1x16x16xf32> to vector<16x16xf32>
    %75 = vector.shape_cast %72 : vector<16x16xf32> to vector<1x16x16xf32>
    tpu.vector_store %arg6[%c12, %c0_34, %c0_35], %75 {strides = array<i32>} : memref<16x16x16xf32, #tpu.memory_space<vmem>>, vector<1x16x16xf32>,
    %76 = vector.extract_strided_slice %10 {offsets = [208, 0], sizes = [16, 16], strides = [1, 1]} : vector<256x16xf32> to vector<16x16xf32>
    %77 = tpu.transpose %76, [1, 0] : vector<16x16xf32> -> vector<16x16xf32>
    %c13 = arith.constant 13 : index
    %c0_36 = arith.constant 0 : index
    %c0_37 = arith.constant 0 : index
    %78 = vector.load %arg6[%c13, %c0_36, %c0_37] : memref<16x16x16xf32, #tpu.memory_space<vmem>>, vector<1x16x16xf32>
    %79 = vector.shape_cast %78 : vector<1x16x16xf32> to vector<16x16xf32>
    %80 = vector.shape_cast %77 : vector<16x16xf32> to vector<1x16x16xf32>
    tpu.vector_store %arg6[%c13, %c0_36, %c0_37], %80 {strides = array<i32>} : memref<16x16x16xf32, #tpu.memory_space<vmem>>, vector<1x16x16xf32>,
    %81 = vector.extract_strided_slice %10 {offsets = [224, 0], sizes = [16, 16], strides = [1, 1]} : vector<256x16xf32> to vector<16x16xf32>
    %82 = tpu.transpose %81, [1, 0] : vector<16x16xf32> -> vector<16x16xf32>
    %c14 = arith.constant 14 : index
    %c0_38 = arith.constant 0 : index
    %c0_39 = arith.constant 0 : index
    %83 = vector.load %arg6[%c14, %c0_38, %c0_39] : memref<16x16x16xf32, #tpu.memory_space<vmem>>, vector<1x16x16xf32>
    %84 = vector.shape_cast %83 : vector<1x16x16xf32> to vector<16x16xf32>
    %85 = vector.shape_cast %82 : vector<16x16xf32> to vector<1x16x16xf32>
    tpu.vector_store %arg6[%c14, %c0_38, %c0_39], %85 {strides = array<i32>} : memref<16x16x16xf32, #tpu.memory_space<vmem>>, vector<1x16x16xf32>,
    %86 = vector.extract_strided_slice %10 {offsets = [240, 0], sizes = [16, 16], strides = [1, 1]} : vector<256x16xf32> to vector<16x16xf32>
    %87 = tpu.transpose %86, [1, 0] : vector<16x16xf32> -> vector<16x16xf32>
    %c15 = arith.constant 15 : index
    %c0_40 = arith.constant 0 : index
    %c0_41 = arith.constant 0 : index
    %88 = vector.load %arg6[%c15, %c0_40, %c0_41] : memref<16x16x16xf32, #tpu.memory_space<vmem>>, vector<1x16x16xf32>
    %89 = vector.shape_cast %88 : vector<1x16x16xf32> to vector<16x16xf32>
    %90 = vector.shape_cast %87 : vector<16x16xf32> to vector<1x16x16xf32>
    tpu.vector_store %arg6[%c15, %c0_40, %c0_41], %90 {strides = array<i32>} : memref<16x16x16xf32, #tpu.memory_space<vmem>>, vector<1x16x16xf32>,
    %c0_42 = arith.constant 0 : index
    %c0_43 = arith.constant 0 : index
    %c0_44 = arith.constant 0 : index
    %91 = vector.load %arg6[%c0_42, %c0_43, %c0_44] : memref<16x16x16xf32, #tpu.memory_space<vmem>>, vector<16x16x16xf32>
    %92 = vector.shape_cast %91 : vector<16x16x16xf32> to vector<256x16xf32>
    %cst_45 = arith.constant dense<0.000000e+00> : vector<256x16xf32>
    %93 = tpu.matmul %92, %1, %cst_45 {dimension_numbers = #tpu.dot_dimension_numbers<[1], [0], [0], [1], [0, 0, 1, 1], [], []>} : vector<256x16xf32>, vector<16x16xf32>, vector<256x16xf32> -> vector<256x16xf32>
    %94 = vector.shape_cast %93 : vector<256x16xf32> to vector<16x16x16xf32>
    %95 = vector.extract_strided_slice %94 {offsets = [0, 0, 0], sizes = [4, 16, 16], strides = [1, 1, 1]} : vector<16x16x16xf32> to vector<4x16x16xf32>
    %96 = vector.extract_strided_slice %94 {offsets = [4, 0, 0], sizes = [4, 16, 16], strides = [1, 1, 1]} : vector<16x16x16xf32> to vector<4x16x16xf32>
    %97 = vector.extract_strided_slice %94 {offsets = [8, 0, 0], sizes = [4, 16, 16], strides = [1, 1, 1]} : vector<16x16x16xf32> to vector<4x16x16xf32>
    %98 = vector.extract_strided_slice %94 {offsets = [12, 0, 0], sizes = [4, 16, 16], strides = [1, 1, 1]} : vector<16x16x16xf32> to vector<4x16x16xf32>
    %99 = arith.mulf %95, %95 : vector<4x16x16xf32>
    %100 = arith.mulf %96, %96 : vector<4x16x16xf32>
    %101 = arith.mulf %95, %96 : vector<4x16x16xf32>
    %102 = arith.subf %98, %101 : vector<4x16x16xf32>
    %103 = arith.subf %97, %99 : vector<4x16x16xf32>
    %104 = arith.subf %103, %100 : vector<4x16x16xf32>
    %cst_46 = arith.constant 2.000000e+00 : f32
    %105 = vector.broadcast %cst_46 : f32 to vector<4x16x16xf32>
    %106 = arith.mulf %105, %101 : vector<4x16x16xf32>
    %cst_47 = arith.constant 9.99999974E-5 : f32
    %107 = vector.broadcast %cst_47 : f32 to vector<4x16x16xf32>
    %108 = arith.addf %106, %107 : vector<4x16x16xf32>
    %cst_48 = arith.constant 2.000000e+00 : f32
    %109 = vector.broadcast %cst_48 : f32 to vector<4x16x16xf32>
    %110 = arith.mulf %109, %102 : vector<4x16x16xf32>
    %cst_49 = arith.constant 8.99999984E-4 : f32
    %111 = vector.broadcast %cst_49 : f32 to vector<4x16x16xf32>
    %112 = arith.addf %110, %111 : vector<4x16x16xf32>
    %113 = arith.mulf %108, %112 : vector<4x16x16xf32>
    %114 = arith.addf %99, %100 : vector<4x16x16xf32>
    %cst_50 = arith.constant 9.99999974E-5 : f32
    %115 = vector.broadcast %cst_50 : f32 to vector<4x16x16xf32>
    %116 = arith.addf %114, %115 : vector<4x16x16xf32>
    %cst_51 = arith.constant 8.99999984E-4 : f32
    %117 = vector.broadcast %cst_51 : f32 to vector<4x16x16xf32>
    %118 = arith.addf %104, %117 : vector<4x16x16xf32>
    %119 = arith.mulf %116, %118 : vector<4x16x16xf32>
    %120 = tpu.reciprocal %119 : vector<4x16x16xf32> -> vector<4x16x16xf32>
    %121 = arith.mulf %113, %120 : vector<4x16x16xf32>
    %cst_52 = arith.constant dense<0.000000e+00> : vector<4x16xf32>
    %122 = vector.multi_reduction <add>, %121, %cst_52 [2] : vector<4x16x16xf32> to vector<4x16xf32>
    %cst_53 = arith.constant dense<0.000000e+00> : vector<4xf32>
    %123 = vector.multi_reduction <add>, %122, %cst_53 [1] : vector<4x16xf32> to vector<4xf32>
    %124 = vector.shape_cast %123 : vector<4xf32> to vector<4x1xf32>
    %125 = vector.shape_cast %124 : vector<4x1xf32> to vector<1x4x1xf32>
    %c0_54 = arith.constant 0 : index
    %c0_55 = arith.constant 0 : index
    %c0_56 = arith.constant 0 : index
    %126 = vector.load %arg5[%c0_54, %c0_55, %c0_56] : memref<1x4x1xf32, #tpu.memory_space<vmem>>, vector<1x4x1xf32>
    tpu.vector_store %arg5[%c0_54, %c0_55, %c0_56], %125 {strides = array<i32>} : memref<1x4x1xf32, #tpu.memory_space<vmem>>, vector<1x4x1xf32>,
    return
  }
  func.func @transform_0(%arg0: i32) -> (i32, i32) {
    %c0_i32 = arith.constant 0 : i32
    %c0_i32_0 = arith.constant 0 : i32
    %c0_i32_1 = arith.constant 0 : i32
    return %c0_i32, %c0_i32_0 : i32, i32
  }
  func.func @transform_1(%arg0: i32) -> (i32, i32) {
    %c0_i32 = arith.constant 0 : i32
    %c0_i32_0 = arith.constant 0 : i32
    %c0_i32_1 = arith.constant 0 : i32
    return %c0_i32, %c0_i32_0 : i32, i32
  }
  func.func @transform_2(%arg0: i32) -> (i32, i32, i32) {
    %c0_i32 = arith.constant 0 : i32
    %c0_i32_0 = arith.constant 0 : i32
    %c0_i32_1 = arith.constant 0 : i32
    return %arg0, %c0_i32, %c0_i32_0 : i32, i32, i32
  }
  func.func @transform_3(%arg0: i32) -> (i32, i32, i32) {
    %c0_i32 = arith.constant 0 : i32
    %c0_i32_0 = arith.constant 0 : i32
    %c0_i32_1 = arith.constant 0 : i32
    return %arg0, %c0_i32, %c0_i32_0 : i32, i32, i32
  }
  func.func @transform_4(%arg0: i32) -> (i32, i32, i32) {
    %c0_i32 = arith.constant 0 : i32
    %c0_i32_0 = arith.constant 0 : i32
    %c0_i32_1 = arith.constant 0 : i32
    return %arg0, %c0_i32, %c0_i32_0 : i32, i32, i32
  }
}

</mosaic_0001>

<bundles_post_ra>
// kernel: tpu_custom_call.1
= control target key start
LH: loop header
LB: loop body
LE: loop exit
PB: predicated region body
PF: predicated region fallthrough
CT: control target
= control target key end

     0   :  { %s2503_s0 = inlined_call_operand.hbm [shape: f32[16,16], index: 0, kind: input, shape index: {}]   ;;  %s2504_s1 = inlined_call_operand.hbm [shape: f32[16,16], index: 1, kind: input, shape index: {}]   ;;  %s2505_s2 = inlined_call_operand.hbm [shape: f32[8,16,16], index: 2, kind: input, shape index: {}]   ;;  %s2506_s3 = inlined_call_operand.hbm [shape: f32[8,16,16], index: 3, kind: input, shape index: {}]   ;;  %s2507_s4 = inlined_call_operand.vmem [shape: f32[2,4,1], index: 4, kind: output, shape index: {}]  }
   0x1   :  { %2511 = sst [smem:[#allocation12_spill]] %s2503_s0 }
   0x2   :  { %9 = vsyncpa [#allocation4], 0 }
   0x3   :  { %10 = vsyncpa [#allocation6], 0  ;;  %s2129_s15 = smov 0   ;;  %s2131_s16 = smov 0  }
   0x4   :  { %s2133_s17 = smov 0   ;;  %s2135_s18 = smov 0  }
   0x5 LB: > { %s2148_s19 = sadd.s32 4294967295, %s2098_s18   ;;  %p78_p0 = scmp.ne.s32.totalorder %s2090_s16, %s2086_s15  ;;  %s2098_s18 = sphi %s2135_s18, %s2522_s18   ;;  %s2094_s17 = sphi %s2133_s17, %s2521_s17   ;;  %s2090_s16 = sphi %s2131_s16, %s2520_s16   ;;  %s2086_s15 = sphi %s2129_s15, %s2519_s15  }
   0x6   : > { %p79_p1 = scmp.eq.s32.totalorder %s2148_s19, 0  ;;  %p1760_p2 = scmp.ge.s32.totalorder %s2098_s18, 1 }
   0x7   : > { %p141_p3 = scmp.lt.s32.totalorder %s2098_s18, 3  ;;  %s2513_s0 = sld [smem:[#allocation12_spill]] }
   0x8   : > { %p2156_p4 = por %p79_p1, %p78_p0  ;;  %s2100_s25 = smov [#allocation3]  }
   0x9   : > { %p2163_p5 = pnand %p1760_p2, %p141_p3  ;;  %s154_s26 = sshll.u32 %s2100_s25, 4  ;;  %s155_s26 = int_to_ptr.vmem [resolvable:$true] %s154_s26 }
   0xa   : > { %s2176_s28 = sadd.s32 1, %s2098_s18   ;;  %s2509_s29 = smov 128  }
   0xb   : > { %p1864_p6 = pneg %p2163_p5  ;;  %s2102_s30 = smov 8  }
   0xc   : > { %s62_s5 = ssub.s32 %s2098_s18, %s2176_s28  ;;  %s65_s6 = sadd.s32 1, %s2094_s17 }
   0xd   : > { %s152_s23 = sshll.u32 %s2513_s0, 4  ;;  %p2171_p7 = pnand %p1864_p6, %p79_p1  ;;  %s153_s23 = int_to_ptr.hbm [resolvable:$true] %s152_s23 }
   0xe   : > { %p63_p8 = scmp.eq.s32.totalorder %s62_s5, 0  ;;  %p72_p9 = scmp.ne.s32.totalorder %s2094_s17, %s2090_s16 }
   0xf   : > { %1867 = dma.hbm_to_vmem [thread:$0]  (!%p2171_p7), %s153_s23, 256, %s155_s26, [#allocation4], %s2509_s29, %s2509_s29, %s2102_s30  }
  0x10   : > { %p73_p10 = scmp.eq.s32.totalorder %s2098_s18, 0  ;;  %p1880_p11 = scmp.lt.s32.totalorder %s2098_s18, 2 }
  0x11   : > { %s2191_s7 = scalar_select %p63_p8, %s2094_s17, %s65_s6  }
  0x12   : > { %p74_p12 = por %p73_p10, %p72_p9  ;;  %s182_s8 = sand.u32 1, %s2098_s18  }
  0x13   : > { %s184_s9 = sand.u32 1, %s2094_s17   ;;  %s2508_s11 = sshll.u32 %s2098_s18, 6 }
  0x14   : > { %s2195_s10 = sshll.u32 %s184_s9, 6  ;;  %s192_s14 = scalar_lea.hbm %s2505_s2, %s2508_s11 }
  0x15   : > { %s193_s15 = sshll.u32 %s192_s14, 4  ;;  %s186_s21 = scalar_lea.vmem [#allocation7], %s2195_s10  ;;  %s194_s15 = int_to_ptr.hbm [resolvable:$true] %s193_s15 }
  0x16   : > { %s195_s22 = sshll.u32 %s186_s21, 4  ;;  %p2206_p13 = pnand %p1880_p11, %p74_p12  ;;  %s196_s22 = int_to_ptr.vmem [resolvable:$true] %s195_s22 }
  0x17   : > { %s166_s5 = sshll.u32 %s2504_s1, 4  ;;  %s2103_s6 = smov [#allocation5]   ;;  %s167_s5 = int_to_ptr.hbm [resolvable:$true] %s166_s5 }
  0x18   : > { %s168_s9 = sshll.u32 %s2103_s6, 4  ;;  %s2213_s12 = scalar_lea.sflag [#allocation4], %s182_s8  ;;  %s169_s9 = int_to_ptr.vmem [resolvable:$true] %s168_s9 }
  0x19   : > { %s1966_s13 = sshra.s32 %s194_s15, 4  ;;  %p1970_p2 = pneg %p2206_p13  ;;  %s1967_s13 = int_to_ptr.hbm [resolvable:$true] %s1966_s13 }
  0x1a   : > { %s1968_s14 = scalar_lea.hbm %s1967_s13, 64  ;;  %s1973_s26 = scalar_lea.hbm %s2505_s2, 128 }
  0x1b   : > { %p1969_p0 = scmp.ne.s32.totalorder %s1967_s13, %s1968_s14  ;;  %p1974_p8 = scmp.lt.s32.totalorder %s1967_s13, %s2505_s2 }
  0x1c   : > { %p1975_p9 = scmp.lt.s32.totalorder %s1973_s26, %s1968_s14 }
  0x1d   : > { %p1971_p3 = pnand %p1970_p2, %p1969_p0 }
  0x1e   : > { %p1976_p10 = por %p1975_p9, %p1974_p8 }
  0x1f   : > { %p1972_p6 = pneg %p1971_p3 }
  0x21   : > { %p1977_p11 = pnand %p1976_p10, %p1972_p6 }
  0x23   : > { %1980 = shalt.err (!%p1977_p11)
}
  0x24   : > { %s2517_s8 = smov 128   ;;  %s2518_s29 = sshll.u32 %s2098_s18, 6 }
  0x25   : > { %1874 = dma.hbm_to_vmem [thread:$0]  (!%p2206_p13), %s194_s15, 1024, %s196_s22, %s2213_s12, %s2517_s8, %s2517_s8, %s2102_s30  }
  0x26   : > { %1870 = dma.hbm_to_vmem [thread:$0]  (!%p2171_p7), %s167_s5, 256, %s169_s9, [#allocation6], %s2517_s8, %s2517_s8, %s2102_s30  }
  0x27   : > { %s215_s13 = scalar_lea.hbm %s2506_s3, %s2518_s29  ;;  %s209_s14 = scalar_lea.vmem [#allocation8], %s2195_s10 }
  0x28   : > { %s218_s21 = sshll.u32 %s209_s14, 4  ;;  %s216_s25 = sshll.u32 %s215_s13, 4  ;;  %s219_s21 = int_to_ptr.vmem [resolvable:$true] %s218_s21  ;;  %s217_s25 = int_to_ptr.hbm [resolvable:$true] %s216_s25 }
  0x29   : > { %s2026_s26 = sshra.s32 %s217_s25, 4  ;;  %s2033_s18 = scalar_lea.hbm %s2506_s3, 128  ;;  %s2027_s26 = int_to_ptr.hbm [resolvable:$true] %s2026_s26 }
  0x2a   : > { %s2028_s0 = scalar_lea.hbm %s2027_s26, 64  ;;  %p2034_p7 = scmp.lt.s32.totalorder %s2027_s26, %s2506_s3 }
  0x2b   : > { %p2029_p12 = scmp.ne.s32.totalorder %s2027_s26, %s2028_s0  ;;  %p2035_p6 = scmp.lt.s32.totalorder %s2033_s18, %s2028_s0 }
  0x2d   : > { %p2031_p0 = pnand %p2029_p12, %p1970_p2  ;;  %p2036_p8 = por %p2035_p6, %p2034_p7 }
  0x2f   : > { %p2032_p3 = pneg %p2031_p0 }
  0x31   : > { %p2037_p9 = pnand %p2036_p8, %p2032_p3 }
  0x33   : > { %2040 = shalt.err (!%p2037_p9)
}
  0x34   : > { %1877 = dma.hbm_to_vmem [thread:$0]  (!%p2206_p13), %s217_s25, 1024, %s219_s21, %s2213_s12, %s2517_s8, %s2517_s8, %s2102_s30  }
  0x35   : > { %230 = sbr.rel (%p2163_p5) target bundleno = 880 (0x370), region = 36 }
  0x3a   : > { %2073 = dma.done.wait (%p79_p1), [#allocation4], 256  }
  0x3b   : > { %2075 = vsyncadd (%p79_p1), [#allocation4], 4294967040 }
  0x3c   : > { %2077 = dma.done.wait (%p79_p1), [#allocation6], 256  }
  0x3d   : > { %2079 = vsyncadd (%p79_p1), [#allocation6], 4294967040  ;;  %s242_s0 = sand.u32 1, %s2148_s19   ;;  %s244_s30 = sand.u32 1, %s2090_s16  }
  0x3e   : > { %s1775_s10 = sshll.u32 %s244_s30, 6  ;;  %s243_s24 = scalar_lea.sflag [#allocation4], %s242_s0 }
  0x3f   : > { %s2270_s23 = scalar_lea.vmem [#allocation7], %s1775_s10 }
  0x40   : > { %2081 = dma.done.wait (%p2156_p4), %s243_s24, 2048  }
  0x41   : > { %2083 = vsyncadd (%p2156_p4), %s243_s24, 4294965248  ;;  %v293_v0 = vld [vmem:[#allocation3 + $0x8] sm:$0xff]  ;;  %v292_v1 = vld [vmem:[#allocation3] sm:$0xff]  ;;  %vm344_vm0 = vcmask 130048   ;;  %s2277_s9 = scalar_lea.vmem [#allocation8], %s1775_s10  ;;  %p288_p1 = scmp.lt.s32.totalorder %s2148_s19, 1 }
  0x42   : > { %v296_v2 = vld [vmem:[%s2270_s23] sm:$0xff]  ;;  %455 = vmatpush.msra.mxu0 %v293_v0  ;;  %1848 = vmatpush.msra.mxu2 %v293_v0  ;;  %v297_v6 = vld [vmem:[%s2270_s23 + $0x8] sm:$0xff]  ;;  %v298_v12 = vld [vmem:[%s2270_s23 + $0x10] sm:$0xff] }
  0x43   : > { %v312_v3 = vmul.f32 %v296_v2, %v296_v2  ;;  %v304_v4 = vld [vmem:[%s2277_s9] sm:$0xff]  ;;  %v305_v7 = vld [vmem:[%s2277_s9 + $0x8] sm:$0xff]  ;;  %v313_v9 = vmul.f32 %v297_v6, %v297_v6  ;;  %v306_v13 = vld [vmem:[%s2277_s9 + $0x10] sm:$0xff]  ;;  %v314_v14 = vmul.f32 %v298_v12, %v298_v12  ;;  %s2524_s19 = smov (!%p288_p1, %s2148_s19), 1 }
  0x44   : > { %v320_v5 = vmul.f32 %v304_v4, %v304_v4  ;;  %456 = vmatpush.msra.mxu0 %v292_v1  ;;  %1849 = vmatpush.msra.mxu2 %v292_v1  ;;  %v321_v10 = vmul.f32 %v305_v7, %v305_v7  ;;  %v322_v15 = vmul.f32 %v306_v13, %v306_v13  ;;  %v299_v17 = vld [vmem:[%s2270_s23 + $0x18] sm:$0xff]  ;;  %v300_v22 = vld [vmem:[%s2270_s23 + $0x20] sm:$0xff]  ;;  %v301_v27 = vld [vmem:[%s2270_s23 + $0x28] sm:$0xff]  ;;  %s1777_s20 = sshll.u32 %s2524_s19, 2 }
  0x45   : > { %1778 = vmatmul.msk.f32.vlgmr.msra.gmra.mxu0 %vm344_vm0, %v296_v2  ;;  %v307_v18 = vld [vmem:[%s2277_s9 + $0x18] sm:$0xff]  ;;  %v315_v19 = vmul.f32 %v299_v17, %v299_v17  ;;  %v308_v23 = vld [vmem:[%s2277_s9 + $0x20] sm:$0xff]  ;;  %v316_v24 = vmul.f32 %v300_v22, %v300_v22  ;;  %v309_v28 = vld [vmem:[%s2277_s9 + $0x28] sm:$0xff]  ;;  %v317_v29 = vmul.f32 %v301_v27, %v301_v27  ;;  %v336_v42 = vmul.f32 %v304_v4, %v296_v2  ;;  %s291_s29 = scalar_lea.vmem %s2507_s4, %s1777_s20 }
  0x46   : > { %v328_v8 = vadd.f32 %v320_v5, %v312_v3  ;;  %v329_v11 = vadd.f32 %v321_v10, %v313_v9  ;;  %v330_v16 = vadd.f32 %v322_v15, %v314_v14  ;;  %v323_v20 = vmul.f32 %v307_v18, %v307_v18  ;;  %v302_v32 = vld [vmem:[%s2270_s23 + $0x30] sm:$0xff]  ;;  %v303_v37 = vld [vmem:[%s2270_s23 + $0x38] sm:$0xff] }
  0x47   : > { %v324_v25 = vmul.f32 %v308_v23, %v308_v23  ;;  %v325_v30 = vmul.f32 %v309_v28, %v309_v28  ;;  %v310_v33 = vld [vmem:[%s2277_s9 + $0x30] sm:$0xff]  ;;  %v318_v34 = vmul.f32 %v302_v32, %v302_v32  ;;  %v311_v38 = vld [vmem:[%s2277_s9 + $0x38] sm:$0xff]  ;;  %v319_v39 = vmul.f32 %v303_v37, %v303_v37 }
  0x48   : > { %1794 = vmatmul.msk.f32.vlgmr.msra.gmra.mxu2 %vm344_vm0, %v328_v8  ;;  %v331_v21 = vadd.f32 %v323_v20, %v315_v19  ;;  %v326_v35 = vmul.f32 %v310_v33, %v310_v33  ;;  %v327_v40 = vmul.f32 %v311_v38, %v311_v38  ;;  %v337_v43 = vmul.f32 %v305_v7, %v297_v6  ;;  %v294_v19 = vld [vmem:[#allocation5] sm:$0xff] }
  0x49   : > { %v332_v26 = vadd.f32 %v324_v25, %v316_v24  ;;  %v333_v31 = vadd.f32 %v325_v30, %v317_v29  ;;  %v338_v44 = vmul.f32 %v306_v13, %v298_v12  ;;  %v339_v45 = vmul.f32 %v307_v18, %v299_v17 }
  0x4a   : > { %v334_v36 = vadd.f32 %v326_v35, %v318_v34  ;;  %v335_v41 = vadd.f32 %v327_v40, %v319_v39  ;;  %v340_v46 = vmul.f32 %v308_v23, %v300_v22  ;;  %v341_v47 = vmul.f32 %v309_v28, %v301_v27 }
  0x4b   : > { %v342_v48 = vmul.f32 %v310_v33, %v302_v32  ;;  %v343_v49 = vmul.f32 %v311_v38, %v303_v37 }
  0x4d   : > { %1779 = vmatmul.msk.f32.gmra.mxu0 %vm344_vm0, %v297_v6 }
  0x50   : > { %1795 = vmatmul.msk.f32.gmra.mxu2 %vm344_vm0, %v329_v11 }
  0x55   : > { %1780 = vmatmul.msk.f32.gmra.mxu0 %vm344_vm0, %v298_v12 }
  0x58   : > { %1796 = vmatmul.msk.f32.gmra.mxu2 %vm344_vm0, %v330_v16 }
  0x5d   : > { %1781 = vmatmul.msk.f32.gmra.mxu0 %vm344_vm0, %v299_v17 }
  0x60   : > { %1797 = vmatmul.msk.f32.gmra.mxu2 %vm344_vm0, %v331_v21 }
  0x65   : > { %1782 = vmatmul.msk.f32.gmra.mxu0 %vm344_vm0, %v300_v22 }
  0x68   : > { %1798 = vmatmul.msk.f32.gmra.mxu2 %vm344_vm0, %v332_v26 }
  0x6d   : > { %1783 = vmatmul.msk.f32.gmra.mxu0 %vm344_vm0, %v301_v27 }
  0x70   : > { %1799 = vmatmul.msk.f32.gmra.mxu2 %vm344_vm0, %v333_v31 }
  0x75   : > { %1784 = vmatmul.msk.f32.gmra.mxu0 %vm344_vm0, %v302_v32 }
  0x78   : > { %1800 = vmatmul.msk.f32.gmra.mxu2 %vm344_vm0, %v334_v36 }
  0x7d   : > { %1785 = vmatmul.msk.f32.gmra.mxu0 %vm344_vm0, %v303_v37 }
  0x80   : > { %1801 = vmatmul.msk.f32.gmra.mxu2 %vm344_vm0, %v335_v41 }
  0x85   : > { %1786 = vmatmul.msk.f32.gmra.mxu0 %vm344_vm0, %v304_v4 }
  0x88   : > { %1802 = vmatmul.msk.f32.gmra.mxu2 %vm344_vm0, %v336_v42 }
  0x8d   : > { %1787 = vmatmul.msk.f32.gmra.mxu0 %vm344_vm0, %v305_v7 }
  0x90   : > { %1803 = vmatmul.msk.f32.gmra.mxu2 %vm344_vm0, %v337_v43 }
  0x95   : > { %1788 = vmatmul.msk.f32.gmra.mxu0 %vm344_vm0, %v306_v13 }
  0x98   : > { %1804 = vmatmul.msk.f32.gmra.mxu2 %vm344_vm0, %v338_v44 }
  0x9d   : > { %1789 = vmatmul.msk.f32.gmra.mxu0 %vm344_vm0, %v307_v18  ;;  %v295_v18 = vld [vmem:[#allocation5 + $0x8] sm:$0xff] }
  0x9e   : > { %1255 = vmatpush.msra.mxu1 %v295_v18  ;;  %1850 = vmatpush.msra.mxu3 %v295_v18 }
  0xa0   : > { %1805 = vmatmul.msk.f32.gmra.mxu2 %vm344_vm0, %v339_v45  ;;  %1256 = vmatpush.msra.mxu1 %v294_v19 }
  0xa1   : > { %1851 = vmatpush.msra.mxu3 %v294_v19 }
  0xa5   : > { %1790 = vmatmul.msk.f32.gmra.mxu0 %vm344_vm0, %v308_v23 }
  0xa8   : > { %1806 = vmatmul.msk.f32.gmra.mxu2 %vm344_vm0, %v340_v46 }
  0xad   : > { %1791 = vmatmul.msk.f32.gmra.mxu0 %vm344_vm0, %v309_v28 }
  0xb0   : > { %1807 = vmatmul.msk.f32.gmra.mxu2 %vm344_vm0, %v341_v47 }
  0xb5   : > { %1792 = vmatmul.msk.f32.gmra.mxu0 %vm344_vm0, %v310_v33 }
  0xb8   : > { %1808 = vmatmul.msk.f32.gmra.mxu2 %vm344_vm0, %v342_v48 }
  0xbd   : > { %1793 = vmatmul.msk.f32.gmra.mxu0 %vm344_vm0, %v311_v38 }
  0xc0   : > { %1809 = vmatmul.msk.f32.gmra.mxu2 %vm344_vm0, %v343_v49 }
  0xc2   : > { %v458_v50 = vpop.f32.mrf.mxu0 }
  0xc3   : > { %554 = vxpose.xlu0.b32.start [1/2] (short) (narrow) %v458_v50, 16 }
  0xca   : > { %v461_v52 = vpop.f32.mrf.mxu0 }
  0xcb   : > { %v506_v51 = vpop.f32.mrf.mxu2  ;;  %555 = vxpose.xlu0.b32.end [2/2] (short) (narrow) %v461_v52, 16 }
  0xcc   : > { %833 = vxpose.xlu1.b32.start [1/2] (short) (narrow) %v506_v51, 16 }
  0xd2   : > { %v464_v54 = vpop.f32.mrf.mxu0 }
  0xd3   : > { %v509_v53 = vpop.f32.mrf.mxu2  ;;  %588 = vxpose.xlu2.b32.start [1/2] (short) (narrow) %v464_v54, 16 }
  0xd4   : > { %834 = vxpose.xlu1.b32.end [2/2] (short) (narrow) %v509_v53, 16 }
  0xda   : > { %v467_v56 = vpop.f32.mrf.mxu0 }
  0xdb   : > { %v512_v55 = vpop.f32.mrf.mxu2  ;;  %589 = vxpose.xlu2.b32.end [2/2] (short) (narrow) %v467_v56, 16 }
  0xdc   : > { %868 = vxpose.xlu0.b32.start [1/2] (short) (narrow) %v512_v55, 16 }
  0xe2   : > { %v470_v58 = vpop.f32.mrf.mxu0 }
  0xe3   : > { %v515_v57 = vpop.f32.mrf.mxu2  ;;  %623 = vxpose.xlu1.b32.start [1/2] (short) (narrow) %v470_v58, 16 }
  0xe4   : > { %869 = vxpose.xlu0.b32.end [2/2] (short) (narrow) %v515_v57, 16 }
  0xea   : > { %v473_v60 = vpop.f32.mrf.mxu0 }
  0xeb   : > { %v518_v59 = vpop.f32.mrf.mxu2  ;;  %624 = vxpose.xlu1.b32.end [2/2] (short) (narrow) %v473_v60, 16 }
  0xec   : > { %903 = vxpose.xlu2.b32.start [1/2] (short) (narrow) %v518_v59, 16 }
  0xf2   : > { %v476_v62 = vpop.f32.mrf.mxu0 }
  0xf3   : > { %v521_v61 = vpop.f32.mrf.mxu2  ;;  %658 = vxpose.xlu0.b32.start [1/2] (short) (narrow) %v476_v62, 16 }
  0xf4   : > { %904 = vxpose.xlu2.b32.end [2/2] (short) (narrow) %v521_v61, 16 }
  0xfa   : > { %v479_v0 = vpop.f32.mrf.mxu0 }
  0xfb   : > { %v524_v63 = vpop.f32.mrf.mxu2  ;;  %659 = vxpose.xlu0.b32.end [2/2] (short) (narrow) %v479_v0, 16 }
  0xfc   : > { %938 = vxpose.xlu1.b32.start [1/2] (short) (narrow) %v524_v63, 16 }
 0x102   : > { %v482_v2 = vpop.f32.mrf.mxu0 }
 0x103   : > { %v527_v1 = vpop.f32.mrf.mxu2  ;;  %693 = vxpose.xlu2.b32.start [1/2] (short) (narrow) %v482_v2, 16 }
 0x104   : > { %939 = vxpose.xlu1.b32.end [2/2] (short) (narrow) %v527_v1, 16 }
 0x10a   : > { %v485_v4 = vpop.f32.mrf.mxu0 }
 0x10b   : > { %v530_v3 = vpop.f32.mrf.mxu2  ;;  %694 = vxpose.xlu2.b32.end [2/2] (short) (narrow) %v485_v4, 16 }
 0x10c   : > { %973 = vxpose.xlu0.b32.start [1/2] (short) (narrow) %v530_v3, 16 }
 0x112   : > { %v488_v6 = vpop.f32.mrf.mxu0 }
 0x113   : > { %v533_v5 = vpop.f32.mrf.mxu2  ;;  %728 = vxpose.xlu1.b32.start [1/2] (short) (narrow) %v488_v6, 16 }
 0x114   : > { %974 = vxpose.xlu0.b32.end [2/2] (short) (narrow) %v533_v5, 16 }
 0x11a   : > { %v491_v8 = vpop.f32.mrf.mxu0 }
 0x11b   : > { %v536_v7 = vpop.f32.mrf.mxu2  ;;  %729 = vxpose.xlu1.b32.end [2/2] (short) (narrow) %v491_v8, 16 }
 0x11c   : > { %1008 = vxpose.xlu2.b32.start [1/2] (short) (narrow) %v536_v7, 16 }
 0x122   : > { %v494_v10 = vpop.f32.mrf.mxu0 }
 0x123   : > { %v539_v9 = vpop.f32.mrf.mxu2  ;;  %763 = vxpose.xlu0.b32.start [1/2] (short) (narrow) %v494_v10, 16 }
 0x124   : > { %1009 = vxpose.xlu2.b32.end [2/2] (short) (narrow) %v539_v9, 16 }
 0x12a   : > { %v497_v12 = vpop.f32.mrf.mxu0 }
 0x12b   : > { %v542_v11 = vpop.f32.mrf.mxu2  ;;  %764 = vxpose.xlu0.b32.end [2/2] (short) (narrow) %v497_v12, 16 }
 0x12c   : > { %1043 = vxpose.xlu1.b32.start [1/2] (short) (narrow) %v542_v11, 16 }
 0x132   : > { %v500_v14 = vpop.f32.mrf.mxu0 }
 0x133   : > { %v545_v13 = vpop.f32.mrf.mxu2  ;;  %798 = vxpose.xlu2.b32.start [1/2] (short) (narrow) %v500_v14, 16 }
 0x134   : > { %1044 = vxpose.xlu1.b32.end [2/2] (short) (narrow) %v545_v13, 16 }
 0x13a   : > { %v503_v16 = vpop.f32.mrf.mxu0 }
 0x13b   : > { %v548_v15 = vpop.f32.mrf.mxu2  ;;  %799 = vxpose.xlu2.b32.end [2/2] (short) (narrow) %v503_v16, 16 }
 0x13c   : > { %1078 = vxpose.xlu0.b32.start [1/2] (short) (narrow) %v548_v15, 16 }
 0x143   : > { %v551_v17 = vpop.f32.mrf.mxu2 }
 0x144   : > { %1079 = vxpose.xlu0.b32.end [2/2] (short) (narrow) %v551_v17, 16 }
 0x167   : > { %v570_v20 = vpop.trf.xlu0 }
 0x168   : > { %586 = vst.msk [vmem:[#allocation2] sm:$0xff] %vm344_vm0, %v570_v20 }
 0x16c   : > { %v604_v21 = vpop.trf.xlu2 }
 0x16d   : > { %621 = vst.msk [vmem:[#allocation2 + $0x10] sm:$0xff] %vm344_vm0, %v604_v21 }
 0x16f   : > { %v571_v23 = vpop.trf.xlu0  ;;  %v1113_v24 = vld [vmem:[#allocation2] sm:$0xff] }
 0x170   : > { %v849_v22 = vpop.trf.xlu1  ;;  %1810 = vmatmul.msk.f32.vlgmr.msra.gmra.mxu1 %vm344_vm0, %v1113_v24  ;;  %587 = vst.msk [vmem:[#allocation2 + $0x8] sm:$0xff] %vm344_vm0, %v571_v23 }
 0x171   : > { %866 = vst.msk [vmem:[#allocation2 + $0x80] sm:$0xff] %vm344_vm0, %v849_v22 }
 0x174   : > { %v605_v25 = vpop.trf.xlu2  ;;  %v1115_v29 = vld [vmem:[#allocation2 + $0x10] sm:$0xff] }
 0x175   : > { %622 = vst.msk [vmem:[#allocation2 + $0x18] sm:$0xff] %vm344_vm0, %v605_v25 }
 0x177   : > { %v1114_v28 = vld [vmem:[#allocation2 + $0x8] sm:$0xff] }
 0x178   : > { %v850_v26 = vpop.trf.xlu1  ;;  %v1129_v27 = vld [vmem:[#allocation2 + $0x80] sm:$0xff]  ;;  %1811 = vmatmul.msk.f32.gmra.mxu1 %vm344_vm0, %v1114_v28 }
 0x179   : > { %867 = vst.msk [vmem:[#allocation2 + $0x88] sm:$0xff] %vm344_vm0, %v850_v26  ;;  %1826 = vmatmul.msk.f32.vlgmr.msra.gmra.mxu3 %vm344_vm0, %v1129_v27 }
 0x17c   : > { %v1116_v33 = vld [vmem:[#allocation2 + $0x18] sm:$0xff] }
 0x180   : > { %v884_v30 = vpop.trf.xlu0  ;;  %v1130_v31 = vld [vmem:[#allocation2 + $0x88] sm:$0xff]  ;;  %1812 = vmatmul.msk.f32.gmra.mxu1 %vm344_vm0, %v1115_v29 }
 0x181   : > { %901 = vst.msk [vmem:[#allocation2 + $0x90] sm:$0xff] %vm344_vm0, %v884_v30  ;;  %1827 = vmatmul.msk.f32.gmra.mxu3 %vm344_vm0, %v1130_v31 }
 0x185   : > { %v919_v32 = vpop.trf.xlu2 }
 0x186   : > { %936 = vst.msk [vmem:[#allocation2 + $0xa0] sm:$0xff] %vm344_vm0, %v919_v32 }
 0x187   : > { %v639_v36 = vpop.trf.xlu1 }
 0x188   : > { %v885_v34 = vpop.trf.xlu0  ;;  %v1131_v35 = vld [vmem:[#allocation2 + $0x90] sm:$0xff]  ;;  %656 = vst.msk [vmem:[#allocation2 + $0x20] sm:$0xff] %vm344_vm0, %v639_v36  ;;  %1813 = vmatmul.msk.f32.gmra.mxu1 %vm344_vm0, %v1116_v33 }
 0x189   : > { %902 = vst.msk [vmem:[#allocation2 + $0x98] sm:$0xff] %vm344_vm0, %v885_v34  ;;  %1828 = vmatmul.msk.f32.gmra.mxu3 %vm344_vm0, %v1131_v35 }
 0x18d   : > { %v920_v37 = vpop.trf.xlu2  ;;  %v1133_v41 = vld [vmem:[#allocation2 + $0xa0] sm:$0xff] }
 0x18e   : > { %937 = vst.msk [vmem:[#allocation2 + $0xa8] sm:$0xff] %vm344_vm0, %v920_v37 }
 0x18f   : > { %v640_v39 = vpop.trf.xlu1  ;;  %v1117_v40 = vld [vmem:[#allocation2 + $0x20] sm:$0xff] }
 0x190   : > { %v1132_v38 = vld [vmem:[#allocation2 + $0x98] sm:$0xff]  ;;  %657 = vst.msk [vmem:[#allocation2 + $0x28] sm:$0xff] %vm344_vm0, %v640_v39  ;;  %1814 = vmatmul.msk.f32.gmra.mxu1 %vm344_vm0, %v1117_v40 }
 0x191   : > { %1829 = vmatmul.msk.f32.gmra.mxu3 %vm344_vm0, %v1132_v38 }
 0x195   : > { %v1134_v45 = vld [vmem:[#allocation2 + $0xa8] sm:$0xff] }
 0x197   : > { %v674_v42 = vpop.trf.xlu0  ;;  %v1118_v43 = vld [vmem:[#allocation2 + $0x28] sm:$0xff] }
 0x198   : > { %691 = vst.msk [vmem:[#allocation2 + $0x30] sm:$0xff] %vm344_vm0, %v674_v42  ;;  %1815 = vmatmul.msk.f32.gmra.mxu1 %vm344_vm0, %v1118_v43 }
 0x199   : > { %1830 = vmatmul.msk.f32.gmra.mxu3 %vm344_vm0, %v1133_v41 }
 0x19c   : > { %v709_v44 = vpop.trf.xlu2 }
 0x19d   : > { %726 = vst.msk [vmem:[#allocation2 + $0x40] sm:$0xff] %vm344_vm0, %v709_v44 }
 0x19f   : > { %v675_v47 = vpop.trf.xlu0  ;;  %v1119_v48 = vld [vmem:[#allocation2 + $0x30] sm:$0xff] }
 0x1a0   : > { %v954_v46 = vpop.trf.xlu1  ;;  %692 = vst.msk [vmem:[#allocation2 + $0x38] sm:$0xff] %vm344_vm0, %v675_v47  ;;  %1816 = vmatmul.msk.f32.gmra.mxu1 %vm344_vm0, %v1119_v48 }
 0x1a1   : > { %971 = vst.msk [vmem:[#allocation2 + $0xb0] sm:$0xff] %vm344_vm0, %v954_v46  ;;  %1831 = vmatmul.msk.f32.gmra.mxu3 %vm344_vm0, %v1134_v45 }
 0x1a4   : > { %v710_v49 = vpop.trf.xlu2  ;;  %v1121_v53 = vld [vmem:[#allocation2 + $0x40] sm:$0xff] }
 0x1a5   : > { %727 = vst.msk [vmem:[#allocation2 + $0x48] sm:$0xff] %vm344_vm0, %v710_v49 }
 0x1a7   : > { %v1120_v52 = vld [vmem:[#allocation2 + $0x38] sm:$0xff] }
 0x1a8   : > { %v955_v50 = vpop.trf.xlu1  ;;  %v1135_v51 = vld [vmem:[#allocation2 + $0xb0] sm:$0xff]  ;;  %1817 = vmatmul.msk.f32.gmra.mxu1 %vm344_vm0, %v1120_v52 }
 0x1a9   : > { %972 = vst.msk [vmem:[#allocation2 + $0xb8] sm:$0xff] %vm344_vm0, %v955_v50  ;;  %1832 = vmatmul.msk.f32.gmra.mxu3 %vm344_vm0, %v1135_v51 }
 0x1ac   : > { %v1122_v57 = vld [vmem:[#allocation2 + $0x48] sm:$0xff] }
 0x1b0   : > { %v989_v54 = vpop.trf.xlu0  ;;  %v1136_v55 = vld [vmem:[#allocation2 + $0xb8] sm:$0xff]  ;;  %1818 = vmatmul.msk.f32.gmra.mxu1 %vm344_vm0, %v1121_v53 }
 0x1b1   : > { %1006 = vst.msk [vmem:[#allocation2 + $0xc0] sm:$0xff] %vm344_vm0, %v989_v54  ;;  %1833 = vmatmul.msk.f32.gmra.mxu3 %vm344_vm0, %v1136_v55 }
 0x1b5   : > { %v1024_v56 = vpop.trf.xlu2 }
 0x1b6   : > { %1041 = vst.msk [vmem:[#allocation2 + $0xd0] sm:$0xff] %vm344_vm0, %v1024_v56 }
 0x1b7   : > { %v744_v60 = vpop.trf.xlu1 }
 0x1b8   : > { %v990_v58 = vpop.trf.xlu0  ;;  %v1137_v59 = vld [vmem:[#allocation2 + $0xc0] sm:$0xff]  ;;  %761 = vst.msk [vmem:[#allocation2 + $0x50] sm:$0xff] %vm344_vm0, %v744_v60  ;;  %1819 = vmatmul.msk.f32.gmra.mxu1 %vm344_vm0, %v1122_v57 }
 0x1b9   : > { %1007 = vst.msk [vmem:[#allocation2 + $0xc8] sm:$0xff] %vm344_vm0, %v990_v58  ;;  %1834 = vmatmul.msk.f32.gmra.mxu3 %vm344_vm0, %v1137_v59 }
 0x1bd   : > { %v1025_v61 = vpop.trf.xlu2  ;;  %v1139_v1 = vld [vmem:[#allocation2 + $0xd0] sm:$0xff] }
 0x1be   : > { %1042 = vst.msk [vmem:[#allocation2 + $0xd8] sm:$0xff] %vm344_vm0, %v1025_v61 }
 0x1bf   : > { %v745_v63 = vpop.trf.xlu1  ;;  %v1123_v0 = vld [vmem:[#allocation2 + $0x50] sm:$0xff] }
 0x1c0   : > { %v1138_v62 = vld [vmem:[#allocation2 + $0xc8] sm:$0xff]  ;;  %762 = vst.msk [vmem:[#allocation2 + $0x58] sm:$0xff] %vm344_vm0, %v745_v63  ;;  %1820 = vmatmul.msk.f32.gmra.mxu1 %vm344_vm0, %v1123_v0 }
 0x1c1   : > { %1835 = vmatmul.msk.f32.gmra.mxu3 %vm344_vm0, %v1138_v62 }
 0x1c5   : > { %v1140_v5 = vld [vmem:[#allocation2 + $0xd8] sm:$0xff] }
 0x1c7   : > { %v779_v2 = vpop.trf.xlu0  ;;  %v1124_v3 = vld [vmem:[#allocation2 + $0x58] sm:$0xff] }
 0x1c8   : > { %796 = vst.msk [vmem:[#allocation2 + $0x60] sm:$0xff] %vm344_vm0, %v779_v2  ;;  %1821 = vmatmul.msk.f32.gmra.mxu1 %vm344_vm0, %v1124_v3 }
 0x1c9   : > { %1836 = vmatmul.msk.f32.gmra.mxu3 %vm344_vm0, %v1139_v1 }
 0x1cc   : > { %v814_v4 = vpop.trf.xlu2 }
 0x1cd   : > { %831 = vst.msk [vmem:[#allocation2 + $0x70] sm:$0xff] %vm344_vm0, %v814_v4 }
 0x1cf   : > { %v780_v7 = vpop.trf.xlu0  ;;  %v1125_v8 = vld [vmem:[#allocation2 + $0x60] sm:$0xff] }
 0x1d0   : > { %v1059_v6 = vpop.trf.xlu1  ;;  %797 = vst.msk [vmem:[#allocation2 + $0x68] sm:$0xff] %vm344_vm0, %v780_v7  ;;  %1822 = vmatmul.msk.f32.gmra.mxu1 %vm344_vm0, %v1125_v8 }
 0x1d1   : > { %1076 = vst.msk [vmem:[#allocation2 + $0xe0] sm:$0xff] %vm344_vm0, %v1059_v6  ;;  %1837 = vmatmul.msk.f32.gmra.mxu3 %vm344_vm0, %v1140_v5 }
 0x1d4   : > { %v815_v9 = vpop.trf.xlu2  ;;  %v1127_v13 = vld [vmem:[#allocation2 + $0x70] sm:$0xff] }
 0x1d5   : > { %832 = vst.msk [vmem:[#allocation2 + $0x78] sm:$0xff] %vm344_vm0, %v815_v9 }
 0x1d7   : > { %v1126_v12 = vld [vmem:[#allocation2 + $0x68] sm:$0xff] }
 0x1d8   : > { %v1060_v10 = vpop.trf.xlu1  ;;  %v1141_v11 = vld [vmem:[#allocation2 + $0xe0] sm:$0xff]  ;;  %1823 = vmatmul.msk.f32.gmra.mxu1 %vm344_vm0, %v1126_v12 }
 0x1d9   : > { %1077 = vst.msk [vmem:[#allocation2 + $0xe8] sm:$0xff] %vm344_vm0, %v1060_v10  ;;  %1838 = vmatmul.msk.f32.gmra.mxu3 %vm344_vm0, %v1141_v11 }
 0x1dc   : > { %v1128_v16 = vld [vmem:[#allocation2 + $0x78] sm:$0xff] }
 0x1e0   : > { %v1094_v14 = vpop.trf.xlu0  ;;  %v1142_v15 = vld [vmem:[#allocation2 + $0xe8] sm:$0xff]  ;;  %1824 = vmatmul.msk.f32.gmra.mxu1 %vm344_vm0, %v1127_v13 }
 0x1e1   : > { %1111 = vst.msk [vmem:[#allocation2 + $0xf0] sm:$0xff] %vm344_vm0, %v1094_v14  ;;  %1839 = vmatmul.msk.f32.gmra.mxu3 %vm344_vm0, %v1142_v15 }
 0x1e8   : > { %v1095_v17 = vpop.trf.xlu0  ;;  %v1143_v18 = vld [vmem:[#allocation2 + $0xf0] sm:$0xff]  ;;  %1825 = vmatmul.msk.f32.gmra.mxu1 %vm344_vm0, %v1128_v16 }
 0x1e9   : > { %1112 = vst.msk [vmem:[#allocation2 + $0xf8] sm:$0xff] %vm344_vm0, %v1095_v17  ;;  %1840 = vmatmul.msk.f32.gmra.mxu3 %vm344_vm0, %v1143_v18 }
 0x1ed   : > { %v1258_v19 = vpop.f32.mrf.mxu1 }
 0x1ee   : > { %v1354_v35 = vmul.f32 %v1258_v19, %v1258_v19 }
 0x1f0   : > { %v1144_v20 = vld [vmem:[#allocation2 + $0xf8] sm:$0xff] }
 0x1f1   : > { %1841 = vmatmul.msk.f32.gmra.mxu3 %vm344_vm0, %v1144_v20 }
 0x1f5   : > { %v1261_v21 = vpop.f32.mrf.mxu1 }
 0x1f6   : > { %v1355_v44 = vmul.f32 %v1261_v21, %v1261_v21 }
 0x1fc   : > { %v1306_v22 = vpop.f32.mrf.mxu3 }
 0x1fd   : > { %v2390_v23 = vpop.f32.mrf.mxu1  ;;  %v1386_v37 = vsub.f32 %v1306_v22, %v1354_v35 }
 0x1fe   : > { %v1356_v57 = vmul.f32 %v2390_v23, %v2390_v23 }
 0x204   : > { %v1309_v24 = vpop.f32.mrf.mxu3 }
 0x205   : > { %v2392_v25 = vpop.f32.mrf.mxu1  ;;  %v1387_v47 = vsub.f32 %v1309_v24, %v1355_v44 }
 0x206   : > { %v1357_v16 = vmul.f32 %v2392_v25, %v2392_v25 }
 0x20c   : > { %v1312_v26 = vpop.f32.mrf.mxu3 }
 0x20d   : > { %v2394_v27 = vpop.f32.mrf.mxu1  ;;  %v1388_v62 = vsub.f32 %v1312_v26, %v1356_v57 }
 0x214   : > { %v2396_v28 = vpop.f32.mrf.mxu3 }
 0x215   : > { %v2398_v29 = vpop.f32.mrf.mxu1  ;;  %v1389_v26 = vsub.f32 %v2396_v28, %v1357_v16 }
 0x21c   : > { %v2400_v30 = vpop.f32.mrf.mxu3 }
 0x21d   : > { %v2402_v31 = vpop.f32.mrf.mxu1 }
 0x224   : > { %v2404_v32 = vpop.f32.mrf.mxu3 }
 0x225   : > { %v2406_v33 = vpop.f32.mrf.mxu1 }
 0x22c   : > { %v2408_v34 = vpop.f32.mrf.mxu3 }
 0x22d   : > { %v1282_v36 = vpop.f32.mrf.mxu1 }
 0x22e   : > { %v1362_v38 = vmul.f32 %v1282_v36, %v1282_v36  ;;  %v1370_v51 = vmul.f32 %v1282_v36, %v1258_v19 }
 0x230   : > { %v1394_v39 = vsub.f32 %v1386_v37, %v1362_v38  ;;  %v1442_v40 = vadd.f32 %v1362_v38, %v1354_v35  ;;  %v1402_v0 = vmul.f32 2.0, %v1370_v51 }
 0x232   : > { %v1450_v41 = vadd.f32 0.0001, %v1442_v40  ;;  %v1458_v42 = vadd.f32 0.0009, %v1394_v39  ;;  %v1410_v12 = vadd.f32 0.0001, %v1402_v0 }
 0x234   : > { %v2410_v43 = vpop.f32.mrf.mxu3  ;;  %v1466_v45 = vmul.f32 %v1458_v42, %v1450_v41 }
 0x235   : > { %v1285_v46 = vpop.f32.mrf.mxu1 }
 0x236   : > { %1920 = vrcp.f32 %v1466_v45  ;;  %v1363_v48 = vmul.f32 %v1285_v46, %v1285_v46  ;;  %v1483_v4 = vand.u32 2147483647, %v1466_v45  ;;  %v1485_v5 = vand.u32 2147483648, %v1466_v45 }
 0x237   : > { %v1371_v6 = vmul.f32 %v1285_v46, %v1261_v21  ;;  %vm1479_vm2 = vweird.f32 %v1466_v45 }
 0x238   : > { %v1395_v49 = vsub.f32 %v1387_v47, %v1363_v48  ;;  %v1443_v50 = vadd.f32 %v1363_v48, %v1355_v44  ;;  %vm1484_vm4 = vcmp.eq.f32.partialorder %v1483_v4, 8.507059e+37  ;;  %v1486_v18 = vor.u32 1.1754944e-38, %v1485_v5 }
 0x239   : > { %v1403_v37 = vmul.f32 2.0, %v1371_v6 }
 0x23a   : > { %v1451_v52 = vadd.f32 0.0001, %v1443_v50  ;;  %v1459_v53 = vadd.f32 0.0009, %v1395_v49 }
 0x23c   : > { %v1330_v54 = vpop.f32.mrf.mxu3  ;;  %v1921_v56 = vpop.eup %1920  ;;  %v2414_v58 = vmul.f32 %v1459_v53, %v1451_v52 }
 0x23d   : > { %v1378_v55 = vsub.f32 %v1330_v54, %v1370_v51  ;;  %v1288_v60 = vpop.f32.mrf.mxu1  ;;  %v1475_v61 = vmul.f32 %v1921_v56, %v1466_v45  ;;  %vm1480_vm1 = vweird.f32 %v1921_v56  ;;  %v1411_v51 = vadd.f32 0.0001, %v1403_v37 }
 0x23e   : > { %1922 = vrcp.f32 %v2414_v58  ;;  %v1364_v63 = vmul.f32 %v1288_v60, %v1288_v60  ;;  %vm1481_vm3 = vmor %vm1479_vm2, %vm1480_vm1  ;;  %v1372_v38 = vmul.f32 %v1288_v60, %v2390_v23  ;;  %v1497_v44 = vand.u32 2147483647, %v2414_v58 }
 0x23f   : > { %v1418_v59 = vmul.f32 2.0, %v1378_v55  ;;  %v1476_v1 = vsub.f32 1.0, %v1475_v61  ;;  %v1499_v45 = vand.u32 2147483648, %v2414_v58  ;;  %vm1493_vm6 = vweird.f32 %v2414_v58 }
 0x240   : > { %v1396_v2 = vsub.f32 %v1388_v62, %v1364_v63  ;;  %v1444_v3 = vadd.f32 %v1364_v63, %v1356_v57  ;;  %v1358_v54 = vmul.f32 %v2394_v27, %v2394_v27  ;;  %vm1498_vm8 = vcmp.eq.f32.partialorder %v1497_v44, 8.507059e+37 }
 0x241   : > { %v1426_v7 = vadd.f32 0.0009, %v1418_v59  ;;  %v1477_v8 = vmul.f32 %v1921_v56, %v1476_v1  ;;  %v1404_v1 = vmul.f32 2.0, %v1372_v38 }
 0x242   : > { %v1452_v9 = vadd.f32 0.0001, %v1444_v3  ;;  %v1460_v10 = vadd.f32 0.0009, %v1396_v2  ;;  %v1390_v63 = vsub.f32 %v2400_v30, %v1358_v54 }
 0x243   : > { %v1478_v14 = vadd.f32 %v1921_v56, %v1477_v8  ;;  %v1434_v19 = vmul.f32 %v1426_v7, %v1410_v12 }
 0x244   : > { %v1333_v11 = vpop.f32.mrf.mxu3  ;;  %v1923_v15 = vpop.eup %1922  ;;  %v2419_v17 = vmul.f32 %v1460_v10, %v1452_v9 }
 0x245   : > { %v1379_v13 = vsub.f32 %v1333_v11, %v1371_v6  ;;  %v1291_v21 = vpop.f32.mrf.mxu1  ;;  %v1482_v22 = vsel %vm1481_vm3, %v1921_v56, %v1478_v14  ;;  %v1489_v24 = vmul.f32 %v1923_v15, %v2414_v58  ;;  %vm1494_vm5 = vweird.f32 %v1923_v15 }
 0x246   : > { %1924 = vrcp.f32 %v2419_v17  ;;  %v1365_v35 = vmul.f32 %v1291_v21, %v1291_v21  ;;  %v1487_v36 = vsel %vm1484_vm4, %v1486_v18, %v1482_v22  ;;  %vm1495_vm7 = vmor %vm1493_vm6, %vm1494_vm5  ;;  %v1500_v56 = vor.u32 1.1754944e-38, %v1499_v45 }
 0x247   : > { %v1419_v20 = vmul.f32 2.0, %v1379_v13  ;;  %v1586_v39 = vmul.f32 %v1487_v36, %v1434_v19  ;;  %v1490_v40 = vsub.f32 1.0, %v1489_v24  ;;  %v1373_v2 = vmul.f32 %v1291_v21, %v2392_v25 }
 0x248   : > { %v1397_v41 = vsub.f32 %v1389_v26, %v1365_v35  ;;  %v1445_v42 = vadd.f32 %v1365_v35, %v1357_v16  ;;  %v1511_v7 = vand.u32 2147483647, %v2419_v17  ;;  %v1513_v8 = vand.u32 2147483648, %v2419_v17 }
 0x249   : > { %v1427_v46 = vadd.f32 0.0009, %v1419_v20  ;;  %v1594_v47 = vsel %vm344_vm0, %v1586_v39, 0.0  ;;  %v1491_v48 = vmul.f32 %v1923_v15, %v1490_v40  ;;  %v1412_v14 = vadd.f32 0.0001, %v1404_v1 }
 0x24a   : > { %v1453_v28 = vadd.f32 0.0001, %v1445_v42  ;;  %v1461_v49 = vadd.f32 0.0009, %v1397_v41  ;;  %1595 = vadd.xlane.f32.xlu1 %v1594_v47  ;;  %vm1507_vm10 = vweird.f32 %v2419_v17  ;;  %v1359_v18 = vmul.f32 %v2398_v29, %v2398_v29 }
 0x24b   : > { %v1492_v23 = vadd.f32 %v1923_v15, %v1491_v48  ;;  %v1435_v57 = vmul.f32 %v1427_v46, %v1411_v51  ;;  %vm1512_vm12 = vcmp.eq.f32.partialorder %v1511_v7, 8.507059e+37  ;;  %v1514_v20 = vor.u32 1.1754944e-38, %v1513_v8 }
 0x24c   : > { %v1336_v50 = vpop.f32.mrf.mxu3  ;;  %v1925_v53 = vpop.eup %1924  ;;  %v2431_v55 = vmul.f32 %v1461_v49, %v1453_v28  ;;  %v1391_v36 = vsub.f32 %v2404_v32, %v1359_v18 }
 0x24d   : > { %v1380_v52 = vsub.f32 %v1336_v50, %v1372_v38  ;;  %v1294_v60 = vpop.f32.mrf.mxu1  ;;  %v1496_v61 = vsel %vm1495_vm7, %v1923_v15, %v1492_v23  ;;  %v1503_v62 = vmul.f32 %v1925_v53, %v2419_v17  ;;  %vm1508_vm9 = vweird.f32 %v1925_v53 }
 0x24e   : > { %1926 = vrcp.f32 %v2431_v55  ;;  %v1366_v58 = vmul.f32 %v1294_v60, %v1294_v60  ;;  %v1501_v0 = vsel %vm1498_vm8, %v1500_v56, %v1496_v61  ;;  %vm1509_vm11 = vmor %vm1507_vm10, %vm1508_vm9  ;;  %v1405_v38 = vmul.f32 2.0, %v1373_v2 }
 0x24f   : > { %v1420_v59 = vmul.f32 2.0, %v1380_v52  ;;  %v1587_v3 = vmul.f32 %v1501_v0, %v1435_v57  ;;  %v1504_v4 = vsub.f32 1.0, %v1503_v62  ;;  %v1374_v39 = vmul.f32 %v1294_v60, %v2394_v27 }
 0x250   : > { %v1398_v5 = vsub.f32 %v1390_v63, %v1366_v58  ;;  %v1446_v6 = vadd.f32 %v1366_v58, %v1358_v54  ;;  %v1525_v45 = vand.u32 2147483647, %v2431_v55  ;;  %v1527_v46 = vand.u32 2147483648, %v2431_v55 }
 0x251   : > { %v1428_v9 = vadd.f32 0.0009, %v1420_v59  ;;  %v1597_v10 = vsel %vm344_vm0, %v1587_v3, 0.0  ;;  %v1505_v11 = vmul.f32 %v1925_v53, %v1504_v4  ;;  %v1413_v51 = vadd.f32 0.0001, %v1405_v38 }
 0x252   : > { %v1454_v30 = vadd.f32 0.0001, %v1446_v6  ;;  %v1462_v12 = vadd.f32 0.0009, %v1398_v5  ;;  %1598 = vadd.xlane.f32.xlu2 %v1597_v10  ;;  %vm1521_vm14 = vweird.f32 %v2431_v55  ;;  %vm1526_vm1 = vcmp.eq.f32.partialorder %v1525_v45, 8.507059e+37 }
 0x253   : > { %v1506_v25 = vadd.f32 %v1925_v53, %v1505_v11  ;;  %v1436_v21 = vmul.f32 %v1428_v9, %v1412_v14  ;;  %v1528_v56 = vor.u32 1.1754944e-38, %v1527_v46  ;;  %v1406_v0 = vmul.f32 2.0, %v1374_v39 }
 0x254   : > { %v1339_v13 = vpop.f32.mrf.mxu3  ;;  %v1927_v16 = vpop.eup %1926  ;;  %v2443_v19 = vmul.f32 %v1462_v12, %v1454_v30 }
 0x255   : > { %v1381_v15 = vsub.f32 %v1339_v13, %v1373_v2  ;;  %v1297_v24 = vpop.f32.mrf.mxu1  ;;  %v1510_v26 = vsel %vm1509_vm11, %v1925_v53, %v1506_v25  ;;  %v1517_v35 = vmul.f32 %v1927_v16, %v2431_v55  ;;  %vm1522_vm13 = vweird.f32 %v1927_v16 }
 0x256   : > { %1928 = vrcp.f32 %v2443_v19  ;;  %v1367_v17 = vmul.f32 %v1297_v24, %v1297_v24  ;;  %v1515_v37 = vsel %vm1512_vm12, %v1514_v20, %v1510_v26  ;;  %v1360_v53 = vmul.f32 %v2402_v31, %v2402_v31  ;;  %vm1523_vm15 = vmor %vm1521_vm14, %vm1522_vm13 }
 0x257   : > { %v1421_v22 = vmul.f32 2.0, %v1381_v15  ;;  %v1588_v40 = vmul.f32 %v1515_v37, %v1436_v21  ;;  %v1518_v41 = vsub.f32 1.0, %v1517_v35  ;;  %v1375_v1 = vmul.f32 %v1297_v24, %v2398_v29 }
 0x258   : > { %v1399_v42 = vsub.f32 %v1391_v36, %v1367_v17  ;;  %v1447_v44 = vadd.f32 %v1367_v17, %v1359_v18  ;;  %v1392_v63 = vsub.f32 %v2408_v34, %v1360_v53  ;;  %v1539_v6 = vand.u32 2147483647, %v2443_v19 }
 0x259   : > { %v1429_v47 = vadd.f32 0.0009, %v1421_v22  ;;  %v1600_v48 = vsel %vm344_vm0, %v1588_v40, 0.0  ;;  %v1519_v28 = vmul.f32 %v1927_v16, %v1518_v41  ;;  %v1541_v7 = vand.u32 2147483648, %v2443_v19 }
 0x25a   : > { %v1455_v32 = vadd.f32 0.0001, %v1447_v44  ;;  %v1463_v49 = vadd.f32 0.0009, %v1399_v42  ;;  %1601 = vadd.xlane.f32.xlu0 %v1600_v48  ;;  %v1414_v12 = vadd.f32 0.0001, %v1406_v0  ;;  %vm1535_vm3 = vweird.f32 %v2443_v19 }
 0x25b   : > { %v1520_v27 = vadd.f32 %v1927_v16, %v1519_v28  ;;  %v1437_v57 = vmul.f32 %v1429_v47, %v1413_v51  ;;  %v1361_v15 = vmul.f32 %v2406_v33, %v2406_v33  ;;  %vm1540_vm5 = vcmp.eq.f32.partialorder %v1539_v6, 8.507059e+37 }
 0x25c   : > { %v1342_v50 = vpop.f32.mrf.mxu3  ;;  %v1929_v23 = vpop.eup %1928  ;;  %v2455_v54 = vmul.f32 %v1463_v49, %v1455_v32  ;;  %v1407_v36 = vmul.f32 2.0, %v1375_v1 }
 0x25d   : > { %v1382_v52 = vsub.f32 %v1342_v50, %v1374_v39  ;;  %v1300_v60 = vpop.f32.mrf.mxu1  ;;  %v1524_v61 = vsel %vm1523_vm15, %v1927_v16, %v1520_v27  ;;  %v1531_v62 = vmul.f32 %v1929_v23, %v2443_v19  ;;  %vm1536_vm2 = vweird.f32 %v1929_v23 }
 0x25e   : > { %1930 = vrcp.f32 %v2455_v54  ;;  %v1368_v55 = vmul.f32 %v1300_v60, %v1300_v60  ;;  %v1529_v58 = vsel %vm1526_vm1, %v1528_v56, %v1524_v61  ;;  %vm1537_vm4 = vmor %vm1535_vm3, %vm1536_vm2  ;;  %v1542_v16 = vor.u32 1.1754944e-38, %v1541_v7 }
 0x25f   : > { %v1422_v59 = vmul.f32 2.0, %v1382_v52  ;;  %v1589_v2 = vmul.f32 %v1529_v58, %v1437_v57  ;;  %v1532_v3 = vsub.f32 1.0, %v1531_v62  ;;  %v1393_v26 = vsub.f32 %v2410_v43, %v1361_v15 }
 0x260   : > { %v1400_v4 = vsub.f32 %v1392_v63, %v1368_v55  ;;  %v1448_v5 = vadd.f32 %v1368_v55, %v1360_v53  ;;  %v1376_v17 = vmul.f32 %v1300_v60, %v2402_v31  ;;  %v1553_v41 = vand.u32 2147483647, %v2455_v54 }
 0x261   : > { %v1430_v8 = vadd.f32 0.0009, %v1422_v59  ;;  %v1603_v9 = vsel %vm344_vm0, %v1589_v2, 0.0  ;;  %v1533_v10 = vmul.f32 %v1929_v23, %v1532_v3  ;;  %v1555_v42 = vand.u32 2147483648, %v2455_v54 }
 0x262   : > { %v1456_v34 = vadd.f32 0.0001, %v1448_v5  ;;  %v1464_v11 = vadd.f32 0.0009, %v1400_v4  ;;  %1604 = vadd.xlane.f32.xlu1 %v1603_v9  ;;  %v1415_v28 = vadd.f32 0.0001, %v1407_v36  ;;  %vm1549_vm7 = vweird.f32 %v2455_v54 }
 0x263   : > { %v1534_v29 = vadd.f32 %v1929_v23, %v1533_v10  ;;  %v1438_v18 = vmul.f32 %v1430_v8, %v1414_v12  ;;  %vm1554_vm9 = vcmp.eq.f32.partialorder %v1553_v41, 8.507059e+37  ;;  %v1556_v51 = vor.u32 1.1754944e-38, %v1555_v42 }
 0x264   : > { %v1345_v30 = vpop.f32.mrf.mxu3  ;;  %v1931_v14 = vpop.eup %1930  ;;  %v2467_v25 = vmul.f32 %v1464_v11, %v1456_v34  ;;  %v1408_v57 = vmul.f32 2.0, %v1376_v17  ;;  %v1626_v36 = vlaneseq  ;;  %vm1631_vm3 = vcmask 130112  }
 0x265   : > { %v1383_v13 = vsub.f32 %v1345_v30, %v1375_v1  ;;  %v1303_v21 = vpop.f32.mrf.mxu1  ;;  %v1538_v22 = vsel %vm1537_vm4, %v1929_v23, %v1534_v29  ;;  %v1545_v24 = vmul.f32 %v1931_v14, %v2455_v54  ;;  %vm1550_vm6 = vweird.f32 %v1931_v14 }
 0x266   : > { %1932 = vrcp.f32 %v2467_v25  ;;  %v1369_v19 = vmul.f32 %v1303_v21, %v1303_v21  ;;  %v1543_v35 = vsel %vm1540_vm5, %v1542_v16, %v1538_v22  ;;  %vm1551_vm8 = vmor %vm1549_vm7, %vm1550_vm6  ;;  %v1377_v61 = vmul.f32 %v1303_v21, %v2406_v33 }
 0x267   : > { %v1423_v20 = vmul.f32 2.0, %v1383_v13  ;;  %v1590_v37 = vmul.f32 %v1543_v35, %v1438_v18  ;;  %v1546_v38 = vsub.f32 1.0, %v1545_v24  ;;  %v1567_v62 = vand.u32 2147483647, %v2467_v25 }
 0x268   : > { %v1401_v39 = vsub.f32 %v1393_v26, %v1369_v19  ;;  %v1449_v40 = vadd.f32 %v1369_v19, %v1361_v15  ;;  %v1569_v54 = vand.u32 2147483648, %v2467_v25  ;;  %v1416_v1 = vadd.f32 0.0001, %v1408_v57 }
 0x269   : > { %v1431_v44 = vadd.f32 0.0009, %v1423_v20  ;;  %v1606_v45 = vsel %vm344_vm0, %v1590_v37, 0.0  ;;  %v1547_v46 = vmul.f32 %v1931_v14, %v1546_v38  ;;  %vm1563_vm11 = vweird.f32 %v2467_v25 }
 0x26a   : > { %v1457_v43 = vadd.f32 0.0001, %v1449_v40  ;;  %v1465_v47 = vadd.f32 0.0009, %v1401_v39  ;;  %1607 = vadd.xlane.f32.xlu1 %v1606_v45  ;;  %vm1568_vm13 = vcmp.eq.f32.partialorder %v1567_v62, 8.507059e+37  ;;  %v1570_v33 = vor.u32 1.1754944e-38, %v1569_v54 }
 0x26b   : > { %v1548_v31 = vadd.f32 %v1931_v14, %v1547_v46  ;;  %v1439_v52 = vmul.f32 %v1431_v44, %v1415_v28  ;;  %v1409_v10 = vmul.f32 2.0, %v1377_v61  ;;  %v1627_v37 = vand.u32 127, %v1626_v36 }
 0x26c   : > { %v1348_v48 = vpop.f32.mrf.mxu3  ;;  %v1933_v49 = vpop.eup %1932  ;;  %v1473_v50 = vmul.f32 %v1465_v47, %v1457_v43  ;;  %vm1644_vm4 = vcmask 1042434   ;;  %vm1646_vm5 = vcmask 1043459   ;;  %vm1649_vm6 = vcmask 125952  }
 0x26d   : > { %v1384_v32 = vsub.f32 %v1348_v48, %v1376_v17  ;;  %v1552_v23 = vsel %vm1551_vm8, %v1931_v14, %v1548_v31  ;;  %v1559_v53 = vmul.f32 %v1933_v49, %v2467_v25  ;;  %vm1564_vm10 = vweird.f32 %v1933_v49 }
 0x26e   : > { %1934 = vrcp.f32 %v1473_v50  ;;  %v1557_v56 = vsel %vm1554_vm9, %v1556_v51, %v1552_v23  ;;  %vm1565_vm12 = vmor %vm1563_vm11, %vm1564_vm10  ;;  %v1581_v30 = vand.u32 2147483647, %v1473_v50  ;;  %v1583_v12 = vand.u32 2147483648, %v1473_v50 }
 0x26f   : > { %v1424_v27 = vmul.f32 2.0, %v1384_v32  ;;  %v1591_v59 = vmul.f32 %v1557_v56, %v1439_v52  ;;  %v1560_v60 = vsub.f32 1.0, %v1559_v53  ;;  %v1417_v15 = vadd.f32 0.0001, %v1409_v10 }
 0x270   : > { %vm1577_vm15 = vweird.f32 %v1473_v50  ;;  %v1584_v16 = vor.u32 1.1754944e-38, %v1583_v12  ;;  %vm1582_vm2 = vcmp.eq.f32.partialorder %v1581_v30, 8.507059e+37  ;;  %v1629_v39 = vadd.s32 4294967288, %v1627_v37 }
 0x271   : > { %v1432_v63 = vadd.f32 0.0009, %v1424_v27  ;;  %v1609_v55 = vsel %vm344_vm0, %v1591_v59, 0.0  ;;  %v1561_v58 = vmul.f32 %v1933_v49, %v1560_v60  ;;  %vm1653_vm7 = vcmask 3072  }
 0x272   : > { %1610 = vadd.xlane.f32.xlu1 %v1609_v55 }
 0x273   : > { %v1562_v3 = vadd.f32 %v1933_v49, %v1561_v58  ;;  %v1440_v5 = vmul.f32 %v1432_v63, %v1416_v1 }
 0x274   : > { %v1351_v0 = vpop.f32.mrf.mxu3  ;;  %v1935_v4 = vpop.eup %1934 }
 0x275   : > { %v1385_v2 = vsub.f32 %v1351_v0, %v1377_v61  ;;  %v1566_v7 = vsel %vm1565_vm12, %v1933_v49, %v1562_v3  ;;  %v1573_v8 = vmul.f32 %v1935_v4, %v1473_v50  ;;  %vm1578_vm14 = vweird.f32 %v1935_v4 }
 0x276   : > { %v1571_v9 = vsel %vm1568_vm13, %v1570_v33, %v1566_v7  ;;  %vm1579_vm1 = vmor %vm1577_vm15, %vm1578_vm14 }
 0x277   : > { %v1425_v6 = vmul.f32 2.0, %v1385_v2  ;;  %v1592_v34 = vmul.f32 %v1571_v9, %v1440_v5  ;;  %v1574_v11 = vsub.f32 1.0, %v1573_v8 }
 0x279   : > { %v1433_v13 = vadd.f32 0.0009, %v1425_v6  ;;  %v1612_v29 = vsel %vm344_vm0, %v1592_v34, 0.0  ;;  %v1575_v14 = vmul.f32 %v1935_v4, %v1574_v11 }
 0x27a   : > { %1613 = vadd.xlane.f32.xlu2 %v1612_v29 }
 0x27b   : > { %v1576_v25 = vadd.f32 %v1935_v4, %v1575_v14  ;;  %v1441_v18 = vmul.f32 %v1433_v13, %v1417_v15 }
 0x27d   : > { %v1580_v20 = vsel %vm1579_vm1, %v1935_v4, %v1576_v25 }
 0x27e   : > { %v1585_v21 = vsel %vm1582_vm2, %v1584_v16, %v1580_v20 }
 0x27f   : > { %v1593_v22 = vmul.f32 %v1585_v21, %v1441_v18 }
 0x281   : > { %v1615_v24 = vsel %vm344_vm0, %v1593_v22, 0.0  ;;  %vm1642_vm0 = vcmask 1041409  }
 0x282   : > { %1616 = vadd.xlane.f32.xlu1 %v1615_v24 }
 0x2bd   : > { %v1596_v26 = vpop.xlane.xlu1 %1595 }
 0x2be   : > { %v1628_v47 = vperm.slane %v1596_v26, %v1627_v37 }
 0x2c5   : > { %v1599_v17 = vpop.xlane.xlu2 %1598 }
 0x2c6   : > { %v1630_v44 = vperm.slane %v1599_v17, %v1629_v39 }
 0x2c8   : > { %v1632_v31 = vsel %vm1631_vm3, %v1630_v44, %v1628_v47 }
 0x2cd   : > { %v1602_v40 = vpop.xlane.xlu0 %1601 }
 0x2ce   : > { %v1633_v45 = vperm.slane %v1602_v40, %v1627_v37 }
 0x2d5   : > { %v1605_v19 = vpop.xlane.xlu1 %1604 }
 0x2d6   : > { %v1634_v41 = vperm.slane %v1605_v19, %v1629_v39 }
 0x2d8   : > { %v1635_v48 = vsel %vm1631_vm3, %v1634_v41, %v1633_v45 }
 0x2d9   : > { %v1643_v51 = vsel %vm1642_vm0, %v1635_v48, %v1632_v31 }
 0x2dd   : > { %v1608_v35 = vpop.xlane.xlu1 %1607 }
 0x2de   : > { %v1636_v46 = vperm.slane %v1608_v35, %v1627_v37 }
 0x2e5   : > { %v1611_v38 = vpop.xlane.xlu1 %1610 }
 0x2e6   : > { %v1637_v42 = vperm.slane %v1611_v38, %v1629_v39 }
 0x2e8   : > { %v1638_v28 = vsel %vm1631_vm3, %v1637_v42, %v1636_v46 }
 0x2e9   : > { %v1645_v27 = vsel %vm1644_vm4, %v1638_v28, %v1643_v51 }
 0x2ed   : > { %v1614_v43 = vpop.xlane.xlu2 %1613 }
 0x2ee   : > { %v1639_v49 = vperm.slane %v1614_v43, %v1627_v37 }
 0x2f5   : > { %v1617_v32 = vpop.xlane.xlu1 %1616 }
 0x2f6   : > { %v1640_v50 = vperm.slane %v1617_v32, %v1629_v39 }
 0x2f8   : > { %v1641_v52 = vsel %vm1631_vm3, %v1640_v50, %v1639_v49 }
 0x2f9   : > { %v1647_v23 = vsel %vm1646_vm5, %v1641_v52, %v1645_v27 }
 0x2fa   : > { %v1650_v53 = vsel %vm1649_vm6, %v1647_v23, 0.0 }
 0x2fb   : > { %1651 = vadd.xlane.f32.xlu2 %v1650_v53 }
 0x36e   : > { %v1652_v56 = vpop.xlane.xlu2 %1651 }
 0x36f   : > { %1654 = vst.msk [vmem:[%s291_s29] sm:$0xf] %vm1653_vm7, %v1652_v56 }
 0x370 PF: > { %p13_p4 = scmp.ge.s32.totalorder %s2176_s28, 4   ;;  %s2519_s15 = smov %s2090_s16 }
 0x371   : > { %s2520_s16 = smov %s2094_s17  ;;  %s2521_s17 = smov %s2191_s7 }
 0x372   : > { %s2522_s18 = smov %s2176_s28  ;;  %15 = sbr.rel (!%p13_p4) target bundleno = 5 (0x5), region = 109 }
 0x377   :  { %1674 = vsyncpa [#allocation4], 1 }
 0x378   :  { %1676 = vsyncpa [#allocation4 + $0x1], 1 }
 0x379   :  { %1677 = vsyncpa [#allocation6], 1 }

</bundles_post_ra>
